<compile_context>
chip_gen: v7x
topology: tpu7x:2x2x1
jax: 0.10.0
libtpu: 0.0.40
codegen_flags: <defaults>
</compile_context>

<pallas_src>
import jax
import jax.numpy as jnp
from jax.experimental import pallas as pl
from jax.experimental.pallas import tpu as pltpu

INPUT_DIM = 5
OUTPUT_DIM = 6
XY_DIM = INPUT_DIM + OUTPUT_DIM       # 11
H1, H2, H3 = 1024, 512, 256

MAX_TILE_M = 1024                     # per-tile batch rows (multiple of 8)
SPLIT_THRESHOLD = 256                 # above this, prefer >=2 tiles (v7x megacore)


def discriminator_kernel(
    xy_ref,
    w1_ref, b1_ref,
    w2_ref, b2_ref,
    w3_ref, b3_ref,
    w4_ref, b4_ref,
    out_ref,
):
    # Input tile arrives as f32; cast to bf16 right before each MXU matmul,
    # accumulate in f32, keep elementwise epilogues in f32 (v5e has no bf16
    # VPU/EUP).  LeakyReLU(0.2) == max(x, 0.2*x); the bf16 downcast for the
    # next matmul is fused into the same expression.
    xy = xy_ref[...].astype(jnp.bfloat16)

    # Layer 1: single K=11 matmul (concat already done in the wrapper).
    h = jnp.dot(xy, w1_ref[...], preferred_element_type=jnp.float32) + b1_ref[...]
    h = jnp.maximum(h, 0.2 * h).astype(jnp.bfloat16)

    # Layer 2: (TM,1024) @ (1024,512)
    h = jnp.dot(h, w2_ref[...], preferred_element_type=jnp.float32) + b2_ref[...]
    h = jnp.maximum(h, 0.2 * h).astype(jnp.bfloat16)

    # Layer 3: (TM,512) @ (512,256)
    h = jnp.dot(h, w3_ref[...], preferred_element_type=jnp.float32) + b3_ref[...]
    h = jnp.maximum(h, 0.2 * h)       # stays f32 for the final reduction

    # Layer 4 (256 -> 1): an N=1 matmul would use 1/128 of the MXU, so do a
    # VPU multiply against the (1,256) weight row + cross-lane (XLU) reduce.
    logit = jnp.sum(h * w4_ref[...], axis=-1, keepdims=True) + b4_ref[...]

    # Sigmoid (exact reciprocal: only TM scalars per tile, cost negligible).
    out_ref[...] = 1.0 / (1.0 + jnp.exp(-logit))


def init_params(key):
    """Deterministic synthetic weights, PyTorch-equivalent (in, out) layout, f32."""
    dims = [(XY_DIM, H1), (H1, H2), (H2, H3), (H3, 1)]
    params = []
    for i, (fan_in, fan_out) in enumerate(dims):
        kw, kb, key = jax.random.split(jax.random.fold_in(key, i), 3)
        bound = 1.0 / jnp.sqrt(fan_in)
        w = jax.random.uniform(kw, (fan_in, fan_out), jnp.float32, -bound, bound)
        b = jax.random.uniform(kb, (1, fan_out), jnp.float32, -bound, bound)
        params += [w, b]
    return params


def prepare_kernel_params(params):
    """One-time wrapper-side prep: bf16 matmul weights, f32 biases, and the
    final (256,1) column reshaped to a (1,256) row for the VPU reduce."""
    w1, b1, w2, b2, w3, b3, w4, b4 = params
    return [
        w1.astype(jnp.bfloat16),                  # (11, 1024)
        b1.astype(jnp.float32),                   # (1, 1024)
        w2.astype(jnp.bfloat16),                  # (1024, 512)
        b2.astype(jnp.float32),                   # (1, 512)
        w3.astype(jnp.bfloat16),                  # (512, 256)
        b3.astype(jnp.float32),                   # (1, 256)
        w4.reshape(1, H3).astype(jnp.float32),    # (1, 256) row
        b4.reshape(1, 1).astype(jnp.float32),     # (1, 1)
    ]
    # TODO(synk): optional v7x-only fp8 quantization of w2/w3 (per-tensor
    # scales) left out; would need accuracy validation vs the f32 reference.


def _round8(n):
    return max(8, ((n + 7) // 8) * 8)


def _choose_tile(batch):
    rounded = _round8(batch)
    if rounded <= SPLIT_THRESHOLD:
        # Tiny batch: one sublane-aligned tile.
        return min(rounded, MAX_TILE_M)
    # Enough rows: prefer >= 2 tiles so the "parallel" batch axis can be
    # sharded across both TensorCores on v7x; cap tile size at MAX_TILE_M
    # (larger tiles amortize the ~0.35us grid-step overhead on v6e/v7x).
    target = _round8(pl.cdiv(rounded, 2))
    return min(MAX_TILE_M, target)


def _vmem_limit_bytes(tm):
    lane = 128
    lanes = lambda n: ((n + lane - 1) // lane) * lane
    # Single-buffered weights/biases (constant index_map + pl.Buffered(1)):
    # bf16 matmul weights, f32 biases + final row/scalar (lane-padded).
    weight_bytes = (XY_DIM * H1 + H1 * H2 + H2 * H3) * 2 \
        + (H1 + H2 + H3 + H3 + lane) * 4
    # Double-buffered IO tiles (xy in, out), lane-padded to 128 lanes, f32.
    io_bytes = 2 * tm * (lanes(XY_DIM) + lanes(1)) * 4
    # In-kernel activations: with the fused LeakyReLU+bf16 cast, at most one
    # f32 accumulator and the previous layer's bf16 copy are live per layer.
    act_bytes = tm * (H1 * (4 + 2) + H2 * (4 + 2) + H3 * 4)
    total = weight_bytes + io_bytes + act_bytes
    # 1.5x headroom; clamp inside v7x's 64 MiB physical VMEM.
    return int(min(max(int(1.5 * total), 16 * 1024 * 1024), 56 * 1024 * 1024))


def discriminator_forward(x, y, params):
    # Concat in the wrapper: one trivial XLA op; lets layer 1 be one matmul.
    xy = jnp.concatenate([x, y], axis=1).astype(jnp.float32)   # (B, 11)
    batch = xy.shape[0]

    tm = _choose_tile(batch)
    n_tiles = pl.cdiv(batch, tm)
    padded = n_tiles * tm
    if padded != batch:
        xy = jnp.pad(xy, ((0, padded - batch), (0, 0)))

    kparams = prepare_kernel_params(params)

    # Batch-tiled IO; weights/biases are VMEM-resident across the whole grid
    # and single-buffered (they never change between grid steps).
    def batch_spec(feat):
        return pl.BlockSpec((tm, feat), lambda i: (i, 0))

    def const_spec(shape):
        return pl.BlockSpec(shape, lambda i: (0, 0),
                            pipeline_mode=pl.Buffered(1))

    in_specs = [
        batch_spec(XY_DIM),              # xy
        const_spec((XY_DIM, H1)),        # w1
        const_spec((1, H1)),             # b1
        const_spec((H1, H2)),            # w2
        const_spec((1, H2)),             # b2
        const_spec((H2, H3)),            # w3
        const_spec((1, H3)),             # b3
        const_spec((1, H3)),             # w4 row
        const_spec((1, 1)),              # b4
    ]
    out_specs = batch_spec(1)
    # TODO(synk): lane-dense (n_tiles, TM) output layout skipped — (TM,1)
    # masked stores are a few dozen cycles/tile vs the ~700-cycle MXU phase.

    flops = 2 * padded * (XY_DIM * H1 + H1 * H2 + H2 * H3 + H3)
    bytes_accessed = (
        padded * (XY_DIM + 1) * 4
        + (XY_DIM * H1 + H1 * H2 + H2 * H3) * 2
        + (H1 + H2 + H3 + H3 + 1) * 4
    )

    out = pl.pallas_call(
        discriminator_kernel,
        out_shape=jax.ShapeDtypeStruct((padded, 1), jnp.float32),
        grid_spec=pltpu.PrefetchScalarGridSpec(
            num_scalar_prefetch=0,
            grid=(n_tiles,),
            in_specs=in_specs,
            out_specs=out_specs,
        ),
        compiler_params=pltpu.CompilerParams(
            dimension_semantics=("parallel",),   # both TCs on v7x
            vmem_limit_bytes=_vmem_limit_bytes(tm),
        ),
        cost_estimate=pl.CostEstimate(
            flops=flops,
            transcendentals=padded,
            bytes_accessed=bytes_accessed,
        ),
    )(xy, *kparams)

    return out[:batch]


def reference_forward(x, y, params):
    """Pure-JAX f32 reference for the correctness check."""
    h = jnp.concatenate([x, y], axis=1).astype(jnp.float32)
    w1, b1, w2, b2, w3, b3, w4, b4 = params

    def lrelu(v):
        return jnp.where(v > 0, v, 0.2 * v)

    h = lrelu(h @ w1 + b1)
    h = lrelu(h @ w2 + b2)
    h = lrelu(h @ w3 + b3)
    return jax.nn.sigmoid(h @ w4 + b4)


if __name__ == "__main__":
    key = jax.random.PRNGKey(0)
    kx, ky, kp = jax.random.split(key, 3)
    params = init_params(kp)

    # Small deterministic test batches: 8 (exact tile), 13 (tail padding),
    # 260 (multi-tile path with the >=2-tile split heuristic).
    for batch in (8, 13, 260):
        x = jax.random.normal(jax.random.fold_in(kx, batch), (batch, INPUT_DIM), jnp.float32)
        y = jax.random.normal(jax.random.fold_in(ky, batch), (batch, OUTPUT_DIM), jnp.float32)

        out = discriminator_forward(x, y, params)
        out = jax.block_until_ready(out)
        ref = reference_forward(x, y, params)

        assert out.shape == (batch, 1), out.shape
        # bf16 matmul operands vs an f32 reference -> loose-but-tight tolerance.
        assert jnp.allclose(out, ref, atol=2e-2, rtol=2e-2), (
            "mismatch vs reference", float(jnp.max(jnp.abs(out - ref))))

    print("KERNEL_OK")
</pallas_src>

<mosaic_0001>
module attributes {stable_mosaic.version = 11 : i64} {
  func.func @discriminator_kernel(%arg0: i32, %arg1: memref<8x11xf32, #tpu.memory_space<vmem>>, %arg2: memref<11x1024xbf16, #tpu.memory_space<vmem>>, %arg3: memref<1x1024xf32, #tpu.memory_space<vmem>>, %arg4: memref<1024x512xbf16, #tpu.memory_space<vmem>>, %arg5: memref<1x512xf32, #tpu.memory_space<vmem>>, %arg6: memref<512x256xbf16, #tpu.memory_space<vmem>>, %arg7: memref<1x256xf32, #tpu.memory_space<vmem>>, %arg8: memref<1x256xf32, #tpu.memory_space<vmem>>, %arg9: memref<1x1xf32, #tpu.memory_space<vmem>>, %arg10: memref<8x1xf32, #tpu.memory_space<vmem>>) attributes {dimension_semantics = [#tpu.dimension_semantics<parallel>], iteration_bounds = array<i64: 1>, scalar_prefetch = 0 : i64, scratch_operands = 0 : i64, tpu.core_type = #tpu.core_type<tc>, window_params = [{transform_indices = @transform_0, window_bounds = array<i64: 8, 11>}, {pipeline_mode = #tpu.pipeline_mode<synchronous>, transform_indices = @transform_1, window_bounds = array<i64: 11, 1024>}, {pipeline_mode = #tpu.pipeline_mode<synchronous>, transform_indices = @transform_2, window_bounds = array<i64: 1, 1024>}, {pipeline_mode = #tpu.pipeline_mode<synchronous>, transform_indices = @transform_3, window_bounds = array<i64: 1024, 512>}, {pipeline_mode = #tpu.pipeline_mode<synchronous>, transform_indices = @transform_4, window_bounds = array<i64: 1, 512>}, {pipeline_mode = #tpu.pipeline_mode<synchronous>, transform_indices = @transform_5, window_bounds = array<i64: 512, 256>}, {pipeline_mode = #tpu.pipeline_mode<synchronous>, transform_indices = @transform_6, window_bounds = array<i64: 1, 256>}, {pipeline_mode = #tpu.pipeline_mode<synchronous>, transform_indices = @transform_7, window_bounds = array<i64: 1, 256>}, {pipeline_mode = #tpu.pipeline_mode<synchronous>, transform_indices = @transform_8, window_bounds = array<i64: 1, 1>}, {transform_indices = @transform_9, window_bounds = array<i64: 8, 1>}]} {
    %c0 = arith.constant 0 : index
    %c0_0 = arith.constant 0 : index
    %0 = vector.load %arg1[%c0, %c0_0] : memref<8x11xf32, #tpu.memory_space<vmem>>, vector<8x11xf32>
    %1 = arith.truncf %0 : vector<8x11xf32> to vector<8x11xbf16>
    %c0_1 = arith.constant 0 : index
    %c0_2 = arith.constant 0 : index
    %2 = vector.load %arg2[%c0_1, %c0_2] : memref<11x1024xbf16, #tpu.memory_space<vmem>>, vector<11x1024xbf16>
    %cst = arith.constant dense<0.000000e+00> : vector<8x1024xf32>
    %3 = tpu.matmul %1, %2, %cst {dimension_numbers = #tpu.dot_dimension_numbers<[1], [0], [0], [1], [0, 0, 1, 1], [], []>} : vector<8x11xbf16>, vector<11x1024xbf16>, vector<8x1024xf32> -> vector<8x1024xf32>
    %c0_3 = arith.constant 0 : index
    %c0_4 = arith.constant 0 : index
    %4 = vector.load %arg3[%c0_3, %c0_4] : memref<1x1024xf32, #tpu.memory_space<vmem>>, vector<1x1024xf32>
    %5 = vector.broadcast %4 : vector<1x1024xf32> to vector<8x1024xf32>
    %6 = arith.addf %3, %5 : vector<8x1024xf32>
    %cst_5 = arith.constant 2.000000e-01 : f32
    %7 = vector.broadcast %cst_5 : f32 to vector<8x1024xf32>
    %8 = arith.mulf %7, %6 : vector<8x1024xf32>
    %9 = arith.maximumf %6, %8 : vector<8x1024xf32>
    %10 = arith.truncf %9 : vector<8x1024xf32> to vector<8x1024xbf16>
    %c0_6 = arith.constant 0 : index
    %c0_7 = arith.constant 0 : index
    %11 = vector.load %arg4[%c0_6, %c0_7] : memref<1024x512xbf16, #tpu.memory_space<vmem>>, vector<1024x512xbf16>
    %cst_8 = arith.constant dense<0.000000e+00> : vector<8x512xf32>
    %12 = tpu.matmul %10, %11, %cst_8 {dimension_numbers = #tpu.dot_dimension_numbers<[1], [0], [0], [1], [0, 0, 1, 1], [], []>} : vector<8x1024xbf16>, vector<1024x512xbf16>, vector<8x512xf32> -> vector<8x512xf32>
    %c0_9 = arith.constant 0 : index
    %c0_10 = arith.constant 0 : index
    %13 = vector.load %arg5[%c0_9, %c0_10] : memref<1x512xf32, #tpu.memory_space<vmem>>, vector<1x512xf32>
    %14 = vector.broadcast %13 : vector<1x512xf32> to vector<8x512xf32>
    %15 = arith.addf %12, %14 : vector<8x512xf32>
    %cst_11 = arith.constant 2.000000e-01 : f32
    %16 = vector.broadcast %cst_11 : f32 to vector<8x512xf32>
    %17 = arith.mulf %16, %15 : vector<8x512xf32>
    %18 = arith.maximumf %15, %17 : vector<8x512xf32>
    %19 = arith.truncf %18 : vector<8x512xf32> to vector<8x512xbf16>
    %c0_12 = arith.constant 0 : index
    %c0_13 = arith.constant 0 : index
    %20 = vector.load %arg6[%c0_12, %c0_13] : memref<512x256xbf16, #tpu.memory_space<vmem>>, vector<512x256xbf16>
    %cst_14 = arith.constant dense<0.000000e+00> : vector<8x256xf32>
    %21 = tpu.matmul %19, %20, %cst_14 {dimension_numbers = #tpu.dot_dimension_numbers<[1], [0], [0], [1], [0, 0, 1, 1], [], []>} : vector<8x512xbf16>, vector<512x256xbf16>, vector<8x256xf32> -> vector<8x256xf32>
    %c0_15 = arith.constant 0 : index
    %c0_16 = arith.constant 0 : index
    %22 = vector.load %arg7[%c0_15, %c0_16] : memref<1x256xf32, #tpu.memory_space<vmem>>, vector<1x256xf32>
    %23 = vector.broadcast %22 : vector<1x256xf32> to vector<8x256xf32>
    %24 = arith.addf %21, %23 : vector<8x256xf32>
    %cst_17 = arith.constant 2.000000e-01 : f32
    %25 = vector.broadcast %cst_17 : f32 to vector<8x256xf32>
    %26 = arith.mulf %25, %24 : vector<8x256xf32>
    %27 = arith.maximumf %24, %26 : vector<8x256xf32>
    %c0_18 = arith.constant 0 : index
    %c0_19 = arith.constant 0 : index
    %28 = vector.load %arg8[%c0_18, %c0_19] : memref<1x256xf32, #tpu.memory_space<vmem>>, vector<1x256xf32>
    %29 = vector.broadcast %28 : vector<1x256xf32> to vector<8x256xf32>
    %30 = arith.mulf %27, %29 : vector<8x256xf32>
    %cst_20 = arith.constant dense<0.000000e+00> : vector<8xf32>
    %31 = vector.multi_reduction <add>, %30, %cst_20 [1] : vector<8x256xf32> to vector<8xf32>
    %32 = vector.shape_cast %31 : vector<8xf32> to vector<8x1xf32>
    %c0_21 = arith.constant 0 : index
    %c0_22 = arith.constant 0 : index
    %33 = vector.load %arg9[%c0_21, %c0_22] : memref<1x1xf32, #tpu.memory_space<vmem>>, vector<1x1xf32>
    %34 = vector.broadcast %33 : vector<1x1xf32> to vector<8x1xf32>
    %35 = arith.addf %32, %34 : vector<8x1xf32>
    %cst_23 = arith.constant 0.000000e+00 : f32
    %36 = vector.broadcast %cst_23 : f32 to vector<8x1xf32>
    %37 = arith.subf %36, %35 : vector<8x1xf32>
    %38 = math.exp %37 : vector<8x1xf32>
    %cst_24 = arith.constant 1.000000e+00 : f32
    %39 = vector.broadcast %cst_24 : f32 to vector<8x1xf32>
    %40 = arith.addf %39, %38 : vector<8x1xf32>
    %cst_25 = arith.constant 1.000000e+00 : f32
    %41 = vector.broadcast %cst_25 : f32 to vector<8x1xf32>
    %42 = arith.divf %41, %40 : vector<8x1xf32>
    %c0_26 = arith.constant 0 : index
    %c0_27 = arith.constant 0 : index
    %43 = vector.load %arg10[%c0_26, %c0_27] : memref<8x1xf32, #tpu.memory_space<vmem>>, vector<8x1xf32>
    tpu.vector_store %arg10[%c0_26, %c0_27], %42 {strides = array<i32>} : memref<8x1xf32, #tpu.memory_space<vmem>>, vector<8x1xf32>,
    return
  }
  func.func @transform_0(%arg0: i32) -> (i32, i32) {
    %c0_i32 = arith.constant 0 : i32
    %c0_i32_0 = arith.constant 0 : i32
    return %arg0, %c0_i32 : i32, i32
  }
  func.func @transform_1(%arg0: i32) -> (i32, i32) {
    %c0_i32 = arith.constant 0 : i32
    %c0_i32_0 = arith.constant 0 : i32
    %c0_i32_1 = arith.constant 0 : i32
    return %c0_i32, %c0_i32_0 : i32, i32
  }
  func.func @transform_2(%arg0: i32) -> (i32, i32) {
    %c0_i32 = arith.constant 0 : i32
    %c0_i32_0 = arith.constant 0 : i32
    %c0_i32_1 = arith.constant 0 : i32
    return %c0_i32, %c0_i32_0 : i32, i32
  }
  func.func @transform_3(%arg0: i32) -> (i32, i32) {
    %c0_i32 = arith.constant 0 : i32
    %c0_i32_0 = arith.constant 0 : i32
    %c0_i32_1 = arith.constant 0 : i32
    return %c0_i32, %c0_i32_0 : i32, i32
  }
  func.func @transform_4(%arg0: i32) -> (i32, i32) {
    %c0_i32 = arith.constant 0 : i32
    %c0_i32_0 = arith.constant 0 : i32
    %c0_i32_1 = arith.constant 0 : i32
    return %c0_i32, %c0_i32_0 : i32, i32
  }
  func.func @transform_5(%arg0: i32) -> (i32, i32) {
    %c0_i32 = arith.constant 0 : i32
    %c0_i32_0 = arith.constant 0 : i32
    %c0_i32_1 = arith.constant 0 : i32
    return %c0_i32, %c0_i32_0 : i32, i32
  }
  func.func @transform_6(%arg0: i32) -> (i32, i32) {
    %c0_i32 = arith.constant 0 : i32
    %c0_i32_0 = arith.constant 0 : i32
    %c0_i32_1 = arith.constant 0 : i32
    return %c0_i32, %c0_i32_0 : i32, i32
  }
  func.func @transform_7(%arg0: i32) -> (i32, i32) {
    %c0_i32 = arith.constant 0 : i32
    %c0_i32_0 = arith.constant 0 : i32
    %c0_i32_1 = arith.constant 0 : i32
    return %c0_i32, %c0_i32_0 : i32, i32
  }
  func.func @transform_8(%arg0: i32) -> (i32, i32) {
    %c0_i32 = arith.constant 0 : i32
    %c0_i32_0 = arith.constant 0 : i32
    %c0_i32_1 = arith.constant 0 : i32
    return %c0_i32, %c0_i32_0 : i32, i32
  }
  func.func @transform_9(%arg0: i32) -> (i32, i32) {
    %c0_i32 = arith.constant 0 : i32
    %c0_i32_0 = arith.constant 0 : i32
    return %arg0, %c0_i32 : i32, i32
  }
}

</mosaic_0001>

<bundles_post_ra>
// kernel: tpu_custom_call.1
= control target key start
LH: loop header
LB: loop body
LE: loop exit
PB: predicated region body
PF: predicated region fallthrough
CT: control target
= control target key end

     0   :  { %s3982_s0 = inlined_call_operand.hbm [shape: f32[8,11], index: 0, kind: input, shape index: {}]   ;;  %s3983_s1 = inlined_call_operand.hbm [shape: bf16[11,1024], index: 1, kind: input, shape index: {}]   ;;  %s3984_s2 = inlined_call_operand.vmem [shape: f32[1,1024], index: 2, kind: input, shape index: {}]   ;;  %s3985_s3 = inlined_call_operand.hbm [shape: bf16[1024,512], index: 3, kind: input, shape index: {}]   ;;  %s3986_s4 = inlined_call_operand.vmem [shape: f32[1,512], index: 4, kind: input, shape index: {}]   ;;  %s3987_s5 = inlined_call_operand.hbm [shape: bf16[512,256], index: 5, kind: input, shape index: {}]   ;;  %s3988_s6 = inlined_call_operand.vmem [shape: f32[1,256], index: 6, kind: input, shape index: {}]   ;;  %s3989_s7 = inlined_call_operand.vmem [shape: f32[1,256], index: 7, kind: input, shape index: {}]   ;;  %s3990_s8 = inlined_call_operand.<no memory space> [shape: f32[1,1], index: 8, kind: input, shape index: {}]   ;;  %s3991_s9 = inlined_call_operand.vmem [shape: f32[8,1], index: 9, kind: output, shape index: {}]  }
   0x1   :  { %v14_v0 = vstv %s3990_s8 }
   0x2   :  { %15 = vst [vmem:[#allocation2] sm:$0x1] %v14_v0 }
   0x3   :  { %16 = vsyncpa [#allocation4], 0 }
   0x4   :  { %17 = vsyncpa [#allocation6], 0 }
   0x5   :  { %18 = vsyncpa [#allocation9], 0  ;;  %s3767_s11 = smov [#allocation5]   ;;  %s3673_s15 = scalar_lea.hbm %s3983_s1, 1024 }
   0x6   :  { %s34_s12 = sshll.u32 %s3767_s11, 4  ;;  %p3674_p0 = scmp.ne.s32.totalorder %s3983_s1, %s3673_s15  ;;  %s35_s12 = int_to_ptr.vmem [resolvable:$true] %s34_s12 }
   0x7   :  { %p3677_p1 = scmp.lt.u32.totalorder %s3673_s15, %s3983_s1 }
   0x9   :  { %p3679_p2 = pnand %p3677_p1, %p3674_p0 }
   0xb   :  { %3682 = shalt.err (!%p3679_p2)
}
   0xc   :  { %s3683_s8 = scalar_lea.vmem %s35_s12, 1024  ;;  %p3688_p4 = scmp.lt.s32.totalorder %s35_s12, %s35_s12 }
   0xd   :  { %p3684_p3 = scmp.ne.s32.totalorder %s35_s12, %s3683_s8  ;;  %p3689_p5 = scmp.lt.s32.totalorder %s3683_s8, %s3683_s8 }
   0xf   :  { %p3690_p6 = por %p3689_p5, %p3688_p4 }
  0x11   :  { %p3691_p7 = pnand %p3690_p6, %p3684_p3 }
  0x13   :  { %3694 = shalt.err (!%p3691_p7)
}
  0x14   :  { %s3768_s20 = smov 512   ;;  %s3769_s21 = smov 32  }
  0x15   :  { %40 = dma.hbm_to_vmem [thread:$0]  %s3983_s1, 1024, %s35_s12, [#allocation6], %s3768_s20, %s3768_s20, %s3769_s21  }
  0x16   :  { %s3770_s24 = smov [#allocation3]   ;;  %s3771_s26 = smov [#allocation7]  }
  0x17   :  { %s25_s25 = sshll.u32 %s3770_s24, 4  ;;  %s48_s27 = sshll.u32 %s3771_s26, 4  ;;  %s26_s25 = int_to_ptr.vmem [resolvable:$true] %s25_s25  ;;  %s49_s27 = int_to_ptr.vmem [resolvable:$true] %s48_s27 }
  0x18   :  { %s3695_s30 = scalar_lea.hbm %s3982_s0, 128 }
  0x19   :  { %p3696_p8 = scmp.ne.s32.totalorder %s3982_s0, %s3695_s30  ;;  %p3699_p9 = scmp.lt.u32.totalorder %s3695_s30, %s3982_s0 }
  0x1b   :  { %p3701_p10 = pnand %p3699_p9, %p3696_p8 }
  0x1d   :  { %3704 = shalt.err (!%p3701_p10)
}
  0x1e   :  { %s3705_s1 = scalar_lea.vmem %s26_s25, 128  ;;  %p3710_p12 = scmp.lt.s32.totalorder %s26_s25, %s26_s25 }
  0x1f   :  { %p3706_p11 = scmp.ne.s32.totalorder %s26_s25, %s3705_s1  ;;  %p3711_p13 = scmp.lt.s32.totalorder %s3705_s1, %s3705_s1 }
  0x21   :  { %p3712_p0 = por %p3711_p13, %p3710_p12 }
  0x23   :  { %p3713_p1 = pnand %p3712_p0, %p3706_p11 }
  0x25   :  { %3716 = shalt.err (!%p3713_p1)
}
  0x26   :  { %28 = dma.hbm_to_vmem [thread:$0]  %s3982_s0, 128, %s26_s25, [#allocation4]  }
  0x27   :  { %s3717_s18 = scalar_lea.hbm %s3985_s3, 32768 }
  0x28   :  { %p3718_p2 = scmp.ne.s32.totalorder %s3985_s3, %s3717_s18  ;;  %p3721_p3 = scmp.lt.u32.totalorder %s3717_s18, %s3985_s3 }
  0x2a   :  { %p3723_p4 = pnand %p3721_p3, %p3718_p2 }
  0x2c   :  { %3726 = shalt.err (!%p3723_p4)
}
  0x2d   :  { %s3727_s22 = scalar_lea.vmem %s49_s27, 32768  ;;  %p3732_p6 = scmp.lt.s32.totalorder %s49_s27, %s49_s27 }
  0x2e   :  { %p3728_p5 = scmp.ne.s32.totalorder %s49_s27, %s3727_s22  ;;  %p3733_p7 = scmp.lt.s32.totalorder %s3727_s22, %s3727_s22 }
  0x30   :  { %p3734_p8 = por %p3733_p7, %p3732_p6 }
  0x32   :  { %p3735_p9 = pnand %p3734_p8, %p3728_p5 }
  0x34   :  { %3738 = shalt.err (!%p3735_p9)
}
  0x35   :  { %s3772_s0 = smov 256   ;;  %s3773_s23 = smov 16  }
  0x36   :  { %54 = dma.hbm_to_vmem [thread:$0]  %s3985_s3, 32768, %s49_s27, [#allocation6], %s3772_s0, %s3772_s0, %s3773_s23  }
  0x37   :  { %s3774_s26 = smov [#allocation8]   ;;  %s3739_s10 = scalar_lea.hbm %s3987_s5, 8192 }
  0x38   :  { %s62_s28 = sshll.u32 %s3774_s26, 4  ;;  %p3740_p10 = scmp.ne.s32.totalorder %s3987_s5, %s3739_s10  ;;  %s63_s28 = int_to_ptr.vmem [resolvable:$true] %s62_s28 }
  0x39   :  { %p3743_p11 = scmp.lt.u32.totalorder %s3739_s10, %s3987_s5 }
  0x3b   :  { %p3745_p12 = pnand %p3743_p11, %p3740_p10 }
  0x3d   :  { %3748 = shalt.err (!%p3745_p12)
}
  0x3e   :  { %s3749_s12 = scalar_lea.vmem %s63_s28, 8192  ;;  %p3754_p0 = scmp.lt.s32.totalorder %s63_s28, %s63_s28 }
  0x3f   :  { %p3750_p13 = scmp.ne.s32.totalorder %s63_s28, %s3749_s12  ;;  %p3755_p1 = scmp.lt.s32.totalorder %s3749_s12, %s3749_s12 }
  0x41   :  { %p3756_p2 = por %p3755_p1, %p3754_p0 }
  0x43   :  { %p3757_p3 = pnand %p3756_p2, %p3750_p13 }
  0x45   :  { %3760 = shalt.err (!%p3757_p3)
}
  0x46   :  { %s3775_s3 = smov 128   ;;  %s3776_s27 = smov 8  }
  0x47   :  { %68 = dma.hbm_to_vmem [thread:$0]  %s3987_s5, 8192, %s63_s28, [#allocation9], %s3775_s3, %s3775_s3, %s3776_s27  }
  0x48   :  { %3761 = dma.done.wait [#allocation4], 128  }
  0x49   :  { %3762 = vsyncadd [#allocation4], 4294967168 }
  0x4a   :  { %3763 = dma.done.wait [#allocation6], 33792  }
  0x4b   :  { %3764 = vsyncadd [#allocation6], 4294933504 }
  0x4c   :  { %3765 = dma.done.wait [#allocation9], 8192  }
  0x4d   :  { %3766 = vsyncadd [#allocation9], 4294959104  ;;  %vm176_vm0 = vcmask 1044480   ;;  %v3777_v1 = vmov 0   ;;  %vm177_vm1 = vcmask 1045504   ;;  %v3778_v2 = vmov 65535  }
  0x4e   :  { %236 = vmatprep.mubr.bf16.mxu0 %v3777_v1  ;;  %277 = vmatprep.mubr.bf16.mxu1 %v3777_v1  ;;  %v178_v3 = vsel %vm176_vm0, 4294967295, %v3778_v2  ;;  %v90_v4 = vld [vmem:[#allocation5] sm:$0xff]  ;;  %v91_v7 = vld [vmem:[#allocation5 + $0x8] sm:$0xff]  ;;  %v88_v11 = vld [vmem:[#allocation3] sm:$0xff]  ;;  %vm172_vm2 = vcmask 89088   ;;  %vm2803_vm3 = vcmask 7168  }
  0x4f   :  { %v94_v5 = vld [vmem:[#allocation5 + $0x20] sm:$0x33]  ;;  %v179_v6 = vsel %vm177_vm1, %v178_v3, 0  ;;  %v95_v9 = vld [vmem:[#allocation5 + $0x28] sm:$0x33]  ;;  %v92_v12 = vld [vmem:[#allocation5 + $0x10] sm:$0xff]  ;;  %v89_v26 = vpack.c.bf16 %v88_v11, %v88_v11 }
  0x50   :  { %v2813_v8 = vcombine.high %v90_v4, %v94_v5  ;;  %v2812_v10 = vcombine.low %v90_v4, %v94_v5  ;;  %v2815_v13 = vcombine.high %v91_v7, %v95_v9  ;;  %v2814_v14 = vcombine.low %v91_v7, %v95_v9  ;;  %v96_v15 = vld [vmem:[#allocation5 + $0x30] sm:$0x33]  ;;  %v93_v16 = vld [vmem:[#allocation5 + $0x18] sm:$0xff] }
  0x51   :  { %v97_v17 = vld [vmem:[#allocation5 + $0x38] sm:$0x33]  ;;  %v2816_v20 = vcombine.low %v92_v12, %v96_v15  ;;  %v2817_v21 = vcombine.high %v92_v12, %v96_v15  ;;  %v3191_v31 = vld [vmem:[#allocation7 + $0x4] ss:$16 sps:$4 sm:$0xff]   ;;  %v3189_v33 = vld [vmem:[#allocation7] ss:$16 sps:$4 sm:$0xff]  }
  0x52   :  { %v184_v18 = vand.u32 %v2813_v8, %v179_v6  ;;  %v181_v19 = vand.u32 %v2812_v10, %v179_v6  ;;  %v190_v22 = vand.u32 %v2815_v13, %v179_v6  ;;  %v187_v23 = vand.u32 %v2814_v14, %v179_v6  ;;  %v3194_v32 = vld [vmem:[#allocation7 + $0x204] ss:$16 sps:$4 sm:$0xff]   ;;  %v3192_v34 = vld [vmem:[#allocation7 + $0x200] ss:$16 sps:$4 sm:$0xff]  }
  0x53   :  { %v2818_v24 = vcombine.low %v93_v16, %v97_v17  ;;  %v2819_v25 = vcombine.high %v93_v16, %v97_v17  ;;  %v196_v27 = vand.u32 %v2817_v21, %v179_v6  ;;  %v193_v28 = vand.u32 %v2816_v20, %v179_v6  ;;  %v3200_v35 = vld [vmem:[#allocation7 + $0x224] ss:$16 sps:$4 sm:$0xff]   ;;  %v3195_v37 = vld [vmem:[#allocation7 + $0x20] ss:$16 sps:$4 sm:$0xff]  }
  0x54   :  { %204 = vmatprep.subr.bf16.mxu0 %v184_v18  ;;  %245 = vmatprep.subr.bf16.mxu1 %v190_v22  ;;  %v3197_v36 = vld [vmem:[#allocation7 + $0x24] ss:$16 sps:$4 sm:$0xff]   ;;  %v3198_v38 = vld [vmem:[#allocation7 + $0x220] ss:$16 sps:$4 sm:$0xff]  }
  0x55   :  { %205 = vmatpush1.bf16.msra.mxu0 %v181_v19  ;;  %v202_v29 = vand.u32 %v2819_v25, %v179_v6  ;;  %246 = vmatpush1.bf16.msra.mxu1 %v187_v23  ;;  %v199_v30 = vand.u32 %v2818_v24, %v179_v6  ;;  %v3206_v39 = vld [vmem:[#allocation7 + $0x244] ss:$16 sps:$4 sm:$0xff]   ;;  %v3201_v41 = vld [vmem:[#allocation7 + $0x40] ss:$16 sps:$4 sm:$0xff]  }
  0x56   :  { %286 = vmatprep.subr.bf16.mxu0 %v196_v27  ;;  %v3203_v40 = vld [vmem:[#allocation7 + $0x44] ss:$16 sps:$4 sm:$0xff]   ;;  %v3204_v42 = vld [vmem:[#allocation7 + $0x240] ss:$16 sps:$4 sm:$0xff]  }
  0x57   :  { %327 = vmatprep.subr.bf16.mxu1 %v202_v29  ;;  %v3212_v43 = vld [vmem:[#allocation7 + $0x264] ss:$16 sps:$4 sm:$0xff]   ;;  %v3207_v45 = vld [vmem:[#allocation7 + $0x60] ss:$16 sps:$4 sm:$0xff]  }
  0x58   :  { %2820 = vmatmul.mubr.msk.bf16.vlgmr.msra.gmra.mrb[0].mxu0 %vm172_vm2, %v89_v26  ;;  %2821 = vmatmul.mubr.msk.bf16.vlgmr.msra.gmra.mrb[0].mxu1 %vm172_vm2, %v89_v26  ;;  %v3209_v44 = vld [vmem:[#allocation7 + $0x64] ss:$16 sps:$4 sm:$0xff]   ;;  %v3210_v46 = vld [vmem:[#allocation7 + $0x260] ss:$16 sps:$4 sm:$0xff]  }
  0x59   :  { %287 = vmatpush1.bf16.msra.mxu0 %v193_v28  ;;  %318 = vmatprep.mubr.bf16.mxu0 %v3777_v1  ;;  %v3218_v47 = vld [vmem:[#allocation7 + $0x284] ss:$16 sps:$4 sm:$0xff]   ;;  %v3213_v49 = vld [vmem:[#allocation7 + $0x80] ss:$16 sps:$4 sm:$0xff]  }
  0x5a   :  { %328 = vmatpush1.bf16.msra.mxu1 %v199_v30  ;;  %359 = vmatprep.mubr.bf16.mxu1 %v3777_v1  ;;  %v3215_v48 = vld [vmem:[#allocation7 + $0x84] ss:$16 sps:$4 sm:$0xff]   ;;  %v3216_v50 = vld [vmem:[#allocation7 + $0x280] ss:$16 sps:$4 sm:$0xff]  }
  0x5b   :  { %1950 = vmatprep.subr.bf16.mxu1 %v3191_v31  ;;  %1991 = vmatprep.subr.bf16.mxu0 %v3194_v32  ;;  %v3224_v51 = vld [vmem:[#allocation7 + $0x2a4] ss:$16 sps:$4 sm:$0xff]   ;;  %v3219_v53 = vld [vmem:[#allocation7 + $0xa0] ss:$16 sps:$4 sm:$0xff]   ;;  %v3290_v32 = vld [vmem:[#allocation7 + $0xc] ss:$16 sps:$4 sm:$0xff]  }
  0x5c   :  { %v3221_v52 = vld [vmem:[#allocation7 + $0xa4] ss:$16 sps:$4 sm:$0xff]   ;;  %v3222_v54 = vld [vmem:[#allocation7 + $0x2a0] ss:$16 sps:$4 sm:$0xff]  }
  0x5d   :  { %v3230_v55 = vld [vmem:[#allocation7 + $0x2c4] ss:$16 sps:$4 sm:$0xff]   ;;  %v3225_v57 = vld [vmem:[#allocation7 + $0xc0] ss:$16 sps:$4 sm:$0xff]  }
  0x5e   :  { %v3227_v56 = vld [vmem:[#allocation7 + $0xc4] ss:$16 sps:$4 sm:$0xff]   ;;  %v3228_v58 = vld [vmem:[#allocation7 + $0x2c0] ss:$16 sps:$4 sm:$0xff]  }
  0x5f   :  { %v3236_v59 = vld [vmem:[#allocation7 + $0x2e4] ss:$16 sps:$4 sm:$0xff]   ;;  %v3234_v61 = vld [vmem:[#allocation7 + $0x2e0] ss:$16 sps:$4 sm:$0xff]  }
  0x60   :  { %2822 = vmatmul.mubr.msk.bf16.vlgmr.msra.gmra.mrb[4].mxu0 %vm172_vm2, %v89_v26  ;;  %2823 = vmatmul.mubr.msk.bf16.vlgmr.msra.gmra.mrb[4].mxu1 %vm172_vm2, %v89_v26  ;;  %v3233_v60 = vld [vmem:[#allocation7 + $0xe4] ss:$16 sps:$4 sm:$0xff]   ;;  %v3231_v62 = vld [vmem:[#allocation7 + $0xe0] ss:$16 sps:$4 sm:$0xff]  }
  0x61   :  { %1992 = vmatpush1.bf16.msra.mxu0 %v3192_v34  ;;  %1951 = vmatpush1.bf16.msra.mxu1 %v3189_v33  ;;  %v3242_v63 = vld [vmem:[#allocation7 + $0x304] ss:$16 sps:$4 sm:$0xff]   ;;  %v3240_v1 = vld [vmem:[#allocation7 + $0x300] ss:$16 sps:$4 sm:$0xff]   ;;  %v100_v33 = vlaneseq }
  0x62   :  { %1993 = vmatprep.subr.bf16.mxu0 %v3200_v35  ;;  %1952 = vmatprep.subr.bf16.mxu1 %v3197_v36  ;;  %v3239_v0 = vld [vmem:[#allocation7 + $0x104] ss:$16 sps:$4 sm:$0xff]   ;;  %v3237_v2 = vld [vmem:[#allocation7 + $0x100] ss:$16 sps:$4 sm:$0xff]  }
  0x63   :  { %v3248_v3 = vld [vmem:[#allocation7 + $0x324] ss:$16 sps:$4 sm:$0xff]   ;;  %v3246_v5 = vld [vmem:[#allocation7 + $0x320] ss:$16 sps:$4 sm:$0xff]   ;;  %v3884_v34 = vshrl.u32 %v100_v33, 7 }
  0x64   :  { %v3245_v4 = vld [vmem:[#allocation7 + $0x124] ss:$16 sps:$4 sm:$0xff]   ;;  %v3243_v6 = vld [vmem:[#allocation7 + $0x120] ss:$16 sps:$4 sm:$0xff]  }
  0x65   :  { %1994 = vmatpush1.bf16.msra.mxu0 %v3198_v38  ;;  %1953 = vmatpush1.bf16.msra.mxu1 %v3195_v37  ;;  %v3254_v7 = vld [vmem:[#allocation7 + $0x344] ss:$16 sps:$4 sm:$0xff]   ;;  %v3252_v9 = vld [vmem:[#allocation7 + $0x340] ss:$16 sps:$4 sm:$0xff]   ;;  %v3887_v35 = vsub.s32 0, %v3884_v34  ;;  %v110_v37 = vsub.s32 2, %v3884_v34 }
  0x66   :  { %1995 = vmatprep.subr.bf16.mxu0 %v3206_v39  ;;  %1954 = vmatprep.subr.bf16.mxu1 %v3203_v40  ;;  %v3251_v8 = vld [vmem:[#allocation7 + $0x144] ss:$16 sps:$4 sm:$0xff]   ;;  %v3249_v10 = vld [vmem:[#allocation7 + $0x140] ss:$16 sps:$4 sm:$0xff]   ;;  %v3896_v38 = vsub.s32 1, %v3884_v34  ;;  %v114_v39 = vsub.s32 3, %v3884_v34 }
  0x67   :  { %v3260_v11 = vld [vmem:[#allocation7 + $0x364] ss:$16 sps:$4 sm:$0xff]   ;;  %v3258_v13 = vld [vmem:[#allocation7 + $0x360] ss:$16 sps:$4 sm:$0xff]  }
  0x68   :  { %v3257_v12 = vld [vmem:[#allocation7 + $0x164] ss:$16 sps:$4 sm:$0xff]   ;;  %v3255_v14 = vld [vmem:[#allocation7 + $0x160] ss:$16 sps:$4 sm:$0xff]  }
  0x69   :  { %1996 = vmatpush1.bf16.msra.mxu0 %v3204_v42  ;;  %1955 = vmatpush1.bf16.msra.mxu1 %v3201_v41  ;;  %v3266_v15 = vld [vmem:[#allocation7 + $0x384] ss:$16 sps:$4 sm:$0xff]   ;;  %v3264_v17 = vld [vmem:[#allocation7 + $0x380] ss:$16 sps:$4 sm:$0xff]  }
  0x6a   :  { %1997 = vmatprep.subr.bf16.mxu0 %v3212_v43  ;;  %1956 = vmatprep.subr.bf16.mxu1 %v3209_v44  ;;  %v3263_v16 = vld [vmem:[#allocation7 + $0x184] ss:$16 sps:$4 sm:$0xff]   ;;  %v3261_v18 = vld [vmem:[#allocation7 + $0x180] ss:$16 sps:$4 sm:$0xff]  }
  0x6b   :  { %v3272_v19 = vld [vmem:[#allocation7 + $0x3a4] ss:$16 sps:$4 sm:$0xff]   ;;  %v3270_v21 = vld [vmem:[#allocation7 + $0x3a0] ss:$16 sps:$4 sm:$0xff]  }
  0x6c   :  { %v3269_v20 = vld [vmem:[#allocation7 + $0x1a4] ss:$16 sps:$4 sm:$0xff]   ;;  %v3267_v22 = vld [vmem:[#allocation7 + $0x1a0] ss:$16 sps:$4 sm:$0xff]  }
  0x6d   :  { %1998 = vmatpush1.bf16.msra.mxu0 %v3210_v46  ;;  %1957 = vmatpush1.bf16.msra.mxu1 %v3207_v45  ;;  %v3275_v23 = vld [vmem:[#allocation7 + $0x1c4] ss:$16 sps:$4 sm:$0xff]   ;;  %v3273_v25 = vld [vmem:[#allocation7 + $0x1c0] ss:$16 sps:$4 sm:$0xff]  }
  0x6e   :  { %1999 = vmatprep.subr.bf16.mxu0 %v3218_v47  ;;  %1958 = vmatprep.subr.bf16.mxu1 %v3215_v48  ;;  %v3278_v24 = vld [vmem:[#allocation7 + $0x3c4] ss:$16 sps:$4 sm:$0xff]   ;;  %v3276_v26 = vld [vmem:[#allocation7 + $0x3c0] ss:$16 sps:$4 sm:$0xff]  }
  0x6f   :  { %v3281_v27 = vld [vmem:[#allocation7 + $0x1e4] ss:$16 sps:$4 sm:$0xff]   ;;  %v3279_v29 = vld [vmem:[#allocation7 + $0x1e0] ss:$16 sps:$4 sm:$0xff]  }
  0x70   :  { %v3284_v28 = vld [vmem:[#allocation7 + $0x3e4] ss:$16 sps:$4 sm:$0xff]   ;;  %v3282_v30 = vld [vmem:[#allocation7 + $0x3e0] ss:$16 sps:$4 sm:$0xff]  }
  0x71   :  { %2000 = vmatpush1.bf16.msra.mxu0 %v3216_v50  ;;  %1959 = vmatpush1.bf16.msra.mxu1 %v3213_v49  ;;  %v3287_v31 = vld [vmem:[#allocation7 + $0x404] ss:$16 sps:$4 sm:$0xff]  }
  0x72   :  { %2001 = vmatprep.subr.bf16.mxu0 %v3224_v51  ;;  %1960 = vmatprep.subr.bf16.mxu1 %v3221_v52  ;;  %v3892_v36 = vld [vmem:[%s3984_s2] sm:$0xff]  ;;  %v122_v52 = vsub.s32 5, %v3884_v34 }
  0x73   :  { %v103_v40 = vrot.slane %v3892_v36, %v3887_v35  ;;  %v111_v41 = vrot.slane %v3892_v36, %v110_v37  ;;  %v107_v42 = vrot.slane %v3892_v36, %v3896_v38  ;;  %v115_v43 = vrot.slane %v3892_v36, %v114_v39  ;;  %v3311_v33 = vld [vmem:[#allocation7 + $0x484] ss:$16 sps:$4 sm:$0xff]  }
  0x75   :  { %2002 = vmatpush1.bf16.msra.mxu0 %v3222_v54  ;;  %1961 = vmatpush1.bf16.msra.mxu1 %v3219_v53 }
  0x76   :  { %2003 = vmatprep.subr.bf16.mxu0 %v3230_v55  ;;  %1962 = vmatprep.subr.bf16.mxu1 %v3227_v56 }
  0x79   :  { %2004 = vmatpush1.bf16.msra.mxu0 %v3228_v58  ;;  %1963 = vmatpush1.bf16.msra.mxu1 %v3225_v57 }
  0x7a   :  { %2005 = vmatprep.subr.bf16.mxu0 %v3236_v59  ;;  %1964 = vmatprep.subr.bf16.mxu1 %v3233_v60 }
  0x7d   :  { %2006 = vmatpush1.bf16.msra.mxu0 %v3234_v61  ;;  %1965 = vmatpush1.bf16.msra.mxu1 %v3231_v62 }
  0x7e   :  { %2007 = vmatprep.subr.bf16.mxu0 %v3242_v63  ;;  %1966 = vmatprep.subr.bf16.mxu1 %v3239_v0  ;;  %v123_v0 = vrot.slane %v3892_v36, %v122_v52  ;;  %v3330_v52 = vld [vmem:[#allocation7 + $0xe8] ss:$16 sps:$4 sm:$0xff]  }
  0x81   :  { %2008 = vmatpush1.bf16.msra.mxu0 %v3240_v1  ;;  %1967 = vmatpush1.bf16.msra.mxu1 %v3237_v2 }
  0x82   :  { %2009 = vmatprep.subr.bf16.mxu0 %v3248_v3  ;;  %1968 = vmatprep.subr.bf16.mxu1 %v3245_v4  ;;  %v3288_v4 = vld [vmem:[#allocation7 + $0x8] ss:$16 sps:$4 sm:$0xff]  }
  0x85   :  { %2010 = vmatpush1.bf16.msra.mxu0 %v3246_v5  ;;  %1969 = vmatpush1.bf16.msra.mxu1 %v3243_v6 }
  0x86   :  { %2011 = vmatprep.subr.bf16.mxu0 %v3254_v7  ;;  %1970 = vmatprep.subr.bf16.mxu1 %v3251_v8  ;;  %v3285_v8 = vld [vmem:[#allocation7 + $0x400] ss:$16 sps:$4 sm:$0xff]  }
  0x89   :  { %2012 = vmatpush1.bf16.msra.mxu0 %v3252_v9  ;;  %1971 = vmatpush1.bf16.msra.mxu1 %v3249_v10 }
  0x8a   :  { %2013 = vmatprep.subr.bf16.mxu0 %v3260_v11  ;;  %1972 = vmatprep.subr.bf16.mxu1 %v3257_v12  ;;  %v3293_v11 = vld [vmem:[#allocation7 + $0x424] ss:$16 sps:$4 sm:$0xff]   ;;  %v3296_v12 = vld [vmem:[#allocation7 + $0x2c] ss:$16 sps:$4 sm:$0xff]  }
  0x8d   :  { %2014 = vmatpush1.bf16.msra.mxu0 %v3258_v13  ;;  %1973 = vmatpush1.bf16.msra.mxu1 %v3255_v14 }
  0x8e   :  { %2015 = vmatprep.subr.bf16.mxu0 %v3266_v15  ;;  %1974 = vmatprep.subr.bf16.mxu1 %v3263_v16 }
  0x91   :  { %2016 = vmatpush1.bf16.msra.mxu0 %v3264_v17  ;;  %1975 = vmatpush1.bf16.msra.mxu1 %v3261_v18  ;;  %v3294_v18 = vld [vmem:[#allocation7 + $0x28] ss:$16 sps:$4 sm:$0xff]  }
  0x92   :  { %2017 = vmatprep.subr.bf16.mxu0 %v3272_v19  ;;  %1976 = vmatprep.subr.bf16.mxu1 %v3269_v20 }
  0x95   :  { %2018 = vmatpush1.bf16.msra.mxu0 %v3270_v21  ;;  %1977 = vmatpush1.bf16.msra.mxu1 %v3267_v22  ;;  %v3291_v21 = vld [vmem:[#allocation7 + $0x420] ss:$16 sps:$4 sm:$0xff]   ;;  %v3302_v22 = vld [vmem:[#allocation7 + $0x4c] ss:$16 sps:$4 sm:$0xff]  }
  0x96   :  { %1978 = vmatprep.subr.bf16.mxu1 %v3275_v23  ;;  %2019 = vmatprep.subr.bf16.mxu0 %v3278_v24  ;;  %v3299_v23 = vld [vmem:[#allocation7 + $0x444] ss:$16 sps:$4 sm:$0xff]  }
  0x99   :  { %1979 = vmatpush1.bf16.msra.mxu1 %v3273_v25  ;;  %2020 = vmatpush1.bf16.msra.mxu0 %v3276_v26  ;;  %v3300_v25 = vld [vmem:[#allocation7 + $0x48] ss:$16 sps:$4 sm:$0xff]  }
  0x9a   :  { %1980 = vmatprep.subr.bf16.mxu1 %v3281_v27  ;;  %2021 = vmatprep.subr.bf16.mxu0 %v3284_v28  ;;  %v3297_v27 = vld [vmem:[#allocation7 + $0x440] ss:$16 sps:$4 sm:$0xff]   ;;  %v3308_v28 = vld [vmem:[#allocation7 + $0x6c] ss:$16 sps:$4 sm:$0xff]  }
  0x9d   :  { %1981 = vmatpush1.bf16.msra.mxu1 %v3279_v29  ;;  %2022 = vmatpush1.bf16.msra.mxu0 %v3282_v30  ;;  %v3305_v29 = vld [vmem:[#allocation7 + $0x464] ss:$16 sps:$4 sm:$0xff]   ;;  %v3306_v30 = vld [vmem:[#allocation7 + $0x68] ss:$16 sps:$4 sm:$0xff]  }
  0x9e   :  { %2032 = vmatprep.subr.bf16.mxu0 %v3287_v31  ;;  %2114 = vmatprep.subr.bf16.mxu1 %v3290_v32  ;;  %v3303_v31 = vld [vmem:[#allocation7 + $0x460] ss:$16 sps:$4 sm:$0xff]   ;;  %v3314_v32 = vld [vmem:[#allocation7 + $0x8c] ss:$16 sps:$4 sm:$0xff]  }
 0x12b   :  { %v238_v44 = vpop.f32.mrb[0].mxu0  ;;  %v279_v46 = vpop.f32.mrb[0].mxu1 }
 0x12c   :  { %v239_v45 = vadd.f32 %v238_v44, %v103_v40  ;;  %v240_v47 = vpop.f32.mrb[1].mxu0  ;;  %v280_v48 = vadd.f32 %v279_v46, %v111_v41  ;;  %v281_v50 = vpop.f32.mrb[1].mxu1  ;;  %v3312_v40 = vld [vmem:[#allocation7 + $0x88] ss:$16 sps:$4 sm:$0xff]   ;;  %v3309_v41 = vld [vmem:[#allocation7 + $0x480] ss:$16 sps:$4 sm:$0xff]  }
 0x12d   :  { %v241_v49 = vadd.f32 %v240_v47, %v107_v42  ;;  %v242_v51 = vpop.f32.mrb[2].mxu0  ;;  %v282_v54 = vadd.f32 %v281_v50, %v115_v43  ;;  %v283_v56 = vpop.f32.mrb[2].mxu1  ;;  %v3320_v42 = vld [vmem:[#allocation7 + $0xac] ss:$16 sps:$4 sm:$0xff]   ;;  %v3317_v43 = vld [vmem:[#allocation7 + $0x4a4] ss:$16 sps:$4 sm:$0xff]  }
 0x12e   :  { %v368_v53 = vmul.f32 0.2, %v239_v45  ;;  %v243_v55 = vpop.f32.mrb[3].mxu0  ;;  %v370_v57 = vmul.f32 0.2, %v280_v48  ;;  %v284_v59 = vpop.f32.mrb[3].mxu1 }
 0x12f   :  { %v369_v58 = vmul.f32 0.2, %v241_v49  ;;  %v371_v61 = vmul.f32 0.2, %v282_v54  ;;  %v3318_v44 = vld [vmem:[#allocation7 + $0xa8] ss:$16 sps:$4 sm:$0xff]  }
 0x130   :  { %v376_v60 = vmax.f32 %v239_v45, %v368_v53  ;;  %v378_v62 = vmax.f32 %v280_v48, %v370_v57  ;;  %v3315_v45 = vld [vmem:[#allocation7 + $0x4a0] ss:$16 sps:$4 sm:$0xff]   ;;  %v3326_v46 = vld [vmem:[#allocation7 + $0xcc] ss:$16 sps:$4 sm:$0xff]   ;;  %v3323_v47 = vld [vmem:[#allocation7 + $0x4c4] ss:$16 sps:$4 sm:$0xff]  }
 0x131   :  { %v377_v63 = vmax.f32 %v241_v49, %v369_v58  ;;  %v379_v1 = vmax.f32 %v282_v54, %v371_v61  ;;  %v3324_v48 = vld [vmem:[#allocation7 + $0xc8] ss:$16 sps:$4 sm:$0xff]   ;;  %v3321_v49 = vld [vmem:[#allocation7 + $0x4c0] ss:$16 sps:$4 sm:$0xff]   ;;  %v3332_v50 = vld [vmem:[#allocation7 + $0xec] ss:$16 sps:$4 sm:$0xff]  }
 0x132   :  { %v3911_v2 = vpack.c.bf16 %v378_v62, %v378_v62  ;;  %v3915_v6 = vpack.c.bf16 %v376_v60, %v376_v60  ;;  %v3329_v51 = vld [vmem:[#allocation7 + $0x4e4] ss:$16 sps:$4 sm:$0xff]   ;;  %v3327_v53 = vld [vmem:[#allocation7 + $0x4e0] ss:$16 sps:$4 sm:$0xff]   ;;  %v3338_v54 = vld [vmem:[#allocation7 + $0x10c] ss:$16 sps:$4 sm:$0xff]  }
 0x133   :  { %v385_v3 = vpack.c.bf16 %v377_v63, %v377_v63  ;;  %v3913_v5 = vpop.f32.mrb[4].mxu0  ;;  %v3917_v7 = vpack.c.bf16 %v379_v1, %v379_v1  ;;  %v3919_v10 = vpop.f32.mrb[4].mxu1  ;;  %v3335_v55 = vld [vmem:[#allocation7 + $0x504] ss:$16 sps:$4 sm:$0xff]   ;;  %v3336_v56 = vld [vmem:[#allocation7 + $0x108] ss:$16 sps:$4 sm:$0xff]  }
 0x134   :  { %v322_v9 = vpop.f32.mrb[5].mxu0  ;;  %v3921_v15 = vpop.f32.mrb[5].mxu1  ;;  %v3333_v57 = vld [vmem:[#allocation7 + $0x500] ss:$16 sps:$4 sm:$0xff]   ;;  %v3344_v58 = vld [vmem:[#allocation7 + $0x12c] ss:$16 sps:$4 sm:$0xff]  }
 0x135   :  { %1982 = vmatprep.mubr.bf16.mxu1 %v385_v3  ;;  %v323_v13 = vadd.f32 %v322_v9, %v123_v0  ;;  %v324_v14 = vpop.f32.mrb[6].mxu0  ;;  %2023 = vmatprep.mubr.bf16.mxu0 %v3917_v7  ;;  %v365_v17 = vpop.f32.mrb[6].mxu1  ;;  %v3341_v59 = vld [vmem:[#allocation7 + $0x524] ss:$16 sps:$4 sm:$0xff]   ;;  %v3342_v60 = vld [vmem:[#allocation7 + $0x128] ss:$16 sps:$4 sm:$0xff]  }
 0x136   :  { %1983 = vmatmul.mubr.bf16.vlgmr.msra.gmra.mrb[8].mxu1 %v3915_v6  ;;  %v325_v16 = vpop.f32.mrb[7].mxu0  ;;  %2024 = vmatmul.mubr.bf16.vlgmr.msra.gmra.mrb[8].mxu0 %v3911_v2  ;;  %v366_v20 = vpop.f32.mrb[7].mxu1  ;;  %v3339_v61 = vld [vmem:[#allocation7 + $0x520] ss:$16 sps:$4 sm:$0xff]   ;;  %v3350_v62 = vld [vmem:[#allocation7 + $0x14c] ss:$16 sps:$4 sm:$0xff]  }
 0x137   :  { %2115 = vmatpush1.bf16.msra.mxu1 %v3288_v4  ;;  %v373_v19 = vmul.f32 0.2, %v323_v13  ;;  %2033 = vmatpush1.bf16.msra.mxu0 %v3285_v8  ;;  %v3347_v63 = vld [vmem:[#allocation7 + $0x544] ss:$16 sps:$4 sm:$0xff]   ;;  %v3348_v0 = vld [vmem:[#allocation7 + $0x148] ss:$16 sps:$4 sm:$0xff]  }
 0x138   :  { %2146 = vmatprep.mubr.bf16.mxu1 %v385_v3  ;;  %2034 = vmatprep.subr.bf16.mxu0 %v3293_v11  ;;  %v3345_v1 = vld [vmem:[#allocation7 + $0x540] ss:$16 sps:$4 sm:$0xff]   ;;  %v3356_v3 = vld [vmem:[#allocation7 + $0x16c] ss:$16 sps:$4 sm:$0xff]   ;;  %v3353_v4 = vld [vmem:[#allocation7 + $0x564] ss:$16 sps:$4 sm:$0xff]  }
 0x139   :  { %2116 = vmatprep.subr.bf16.mxu1 %v3296_v12  ;;  %v381_v24 = vmax.f32 %v323_v13, %v373_v19  ;;  %v3354_v8 = vld [vmem:[#allocation7 + $0x168] ss:$16 sps:$4 sm:$0xff]   ;;  %v118_v9 = vsub.s32 4, %v3884_v34  ;;  %v3351_v11 = vld [vmem:[#allocation7 + $0x560] ss:$16 sps:$4 sm:$0xff]   ;;  %v130_v14 = vsub.s32 7, %v3884_v34 }
 0x13a   :  { %v3362_v12 = vld [vmem:[#allocation7 + $0x18c] ss:$16 sps:$4 sm:$0xff]   ;;  %v3359_v13 = vld [vmem:[#allocation7 + $0x584] ss:$16 sps:$4 sm:$0xff]   ;;  %v3360_v16 = vld [vmem:[#allocation7 + $0x188] ss:$16 sps:$4 sm:$0xff]  }
 0x13b   :  { %2117 = vmatpush1.bf16.msra.mxu1 %v3294_v18  ;;  %v3926_v26 = vpack.c.bf16 %v381_v24, %v381_v24  ;;  %2035 = vmatpush1.bf16.msra.mxu0 %v3291_v21  ;;  %v119_v17 = vrot.slane %v3892_v36, %v118_v9  ;;  %v3357_v18 = vld [vmem:[#allocation7 + $0x580] ss:$16 sps:$4 sm:$0xff]   ;;  %v3368_v19 = vld [vmem:[#allocation7 + $0x1ac] ss:$16 sps:$4 sm:$0xff]   ;;  %v3365_v20 = vld [vmem:[#allocation7 + $0x5a4] ss:$16 sps:$4 sm:$0xff]   ;;  %v131_v21 = vrot.slane %v3892_v36, %v130_v14 }
 0x13c   :  { %2118 = vmatprep.subr.bf16.mxu1 %v3302_v22  ;;  %2036 = vmatprep.subr.bf16.mxu0 %v3299_v23  ;;  %v3366_v22 = vld [vmem:[#allocation7 + $0x1a8] ss:$16 sps:$4 sm:$0xff]   ;;  %v3363_v24 = vld [vmem:[#allocation7 + $0x5a0] ss:$16 sps:$4 sm:$0xff]  }
 0x13d   :  { %2064 = vmatprep.mubr.bf16.mxu0 %v3926_v26  ;;  %v321_v23 = vadd.f32 %v3913_v5, %v119_v17  ;;  %v3378_v5 = vld [vmem:[#allocation7 + $0x1e8] ss:$16 sps:$4 sm:$0xff]   ;;  %v3434_v17 = vld [vmem:[#allocation7 + $0x30c] ss:$16 sps:$4 sm:$0xff]  }
 0x13e   :  { %v3420_v9 = vld [vmem:[#allocation7 + $0x2c8] ss:$16 sps:$4 sm:$0xff]  }
 0x13f   :  { %2119 = vmatpush1.bf16.msra.mxu1 %v3300_v25  ;;  %2037 = vmatpush1.bf16.msra.mxu0 %v3297_v27  ;;  %v3374_v25 = vld [vmem:[#allocation7 + $0x1cc] ss:$16 sps:$4 sm:$0xff]   ;;  %v3371_v27 = vld [vmem:[#allocation7 + $0x5c4] ss:$16 sps:$4 sm:$0xff]   ;;  %v3426_v14 = vld [vmem:[#allocation7 + $0x2e8] ss:$16 sps:$4 sm:$0xff]  }
 0x140   :  { %2120 = vmatprep.subr.bf16.mxu1 %v3308_v28  ;;  %2038 = vmatprep.subr.bf16.mxu0 %v3305_v29  ;;  %v364_v28 = vadd.f32 %v3921_v15, %v131_v21  ;;  %v372_v29 = vmul.f32 0.2, %v321_v23  ;;  %v3440_v21 = vld [vmem:[#allocation7 + $0x32c] ss:$16 sps:$4 sm:$0xff]  }
 0x143   :  { %2121 = vmatpush1.bf16.msra.mxu1 %v3306_v30  ;;  %2039 = vmatpush1.bf16.msra.mxu0 %v3303_v31  ;;  %v3372_v30 = vld [vmem:[#allocation7 + $0x1c8] ss:$16 sps:$4 sm:$0xff]   ;;  %v3369_v31 = vld [vmem:[#allocation7 + $0x5c0] ss:$16 sps:$4 sm:$0xff]  }
 0x144   :  { %2122 = vmatprep.subr.bf16.mxu1 %v3314_v32  ;;  %2040 = vmatprep.subr.bf16.mxu0 %v3311_v33  ;;  %v3380_v32 = vld [vmem:[#allocation7 + $0x1ec] ss:$16 sps:$4 sm:$0xff]   ;;  %v3377_v33 = vld [vmem:[#allocation7 + $0x5e4] ss:$16 sps:$4 sm:$0xff]  }
 0x147   :  { %2123 = vmatpush1.bf16.msra.mxu1 %v3312_v40  ;;  %2041 = vmatpush1.bf16.msra.mxu0 %v3309_v41  ;;  %v375_v40 = vmul.f32 0.2, %v364_v28  ;;  %v380_v41 = vmax.f32 %v321_v23, %v372_v29  ;;  %v3438_v23 = vld [vmem:[#allocation7 + $0x328] ss:$16 sps:$4 sm:$0xff]   ;;  %v3441_v29 = vld [vmem:[#allocation7 + $0x740] ss:$16 sps:$4 sm:$0xff]  }
 0x148   :  { %2124 = vmatprep.subr.bf16.mxu1 %v3320_v42  ;;  %2042 = vmatprep.subr.bf16.mxu0 %v3317_v43  ;;  %v3375_v42 = vld [vmem:[#allocation7 + $0x5e0] ss:$16 sps:$4 sm:$0xff]   ;;  %v3386_v43 = vld [vmem:[#allocation7 + $0x20c] ss:$16 sps:$4 sm:$0xff]  }
 0x149   :  { %v383_v15 = vmax.f32 %v364_v28, %v375_v40  ;;  %v3444_v28 = vld [vmem:[#allocation7 + $0x348] ss:$16 sps:$4 sm:$0xff]   ;;  %v3447_v40 = vld [vmem:[#allocation7 + $0x760] ss:$16 sps:$4 sm:$0xff]  }
 0x14b   :  { %2125 = vmatpush1.bf16.msra.mxu1 %v3318_v44  ;;  %2043 = vmatpush1.bf16.msra.mxu0 %v3315_v45  ;;  %v3383_v44 = vld [vmem:[#allocation7 + $0x604] ss:$16 sps:$4 sm:$0xff]   ;;  %v3935_v45 = vpack.c.bf16 %v380_v41, %v380_v41  ;;  %v3458_v41 = vld [vmem:[#allocation7 + $0x38c] ss:$16 sps:$4 sm:$0xff]  }
 0x14c   :  { %2126 = vmatprep.subr.bf16.mxu1 %v3326_v46  ;;  %2044 = vmatprep.subr.bf16.mxu0 %v3323_v47  ;;  %v3384_v46 = vld [vmem:[#allocation7 + $0x208] ss:$16 sps:$4 sm:$0xff]   ;;  %v3381_v47 = vld [vmem:[#allocation7 + $0x600] ss:$16 sps:$4 sm:$0xff]  }
 0x14f   :  { %2127 = vmatpush1.bf16.msra.mxu1 %v3324_v48  ;;  %2045 = vmatpush1.bf16.msra.mxu0 %v3321_v49  ;;  %v3389_v48 = vld [vmem:[#allocation7 + $0x624] ss:$16 sps:$4 sm:$0xff]   ;;  %v3392_v49 = vld [vmem:[#allocation7 + $0x22c] ss:$16 sps:$4 sm:$0xff]  }
 0x150   :  { %2128 = vmatprep.subr.bf16.mxu1 %v3332_v50  ;;  %2046 = vmatprep.subr.bf16.mxu0 %v3329_v51  ;;  %v3938_v50 = vpack.c.bf16 %v383_v15, %v383_v15  ;;  %v3390_v51 = vld [vmem:[#allocation7 + $0x228] ss:$16 sps:$4 sm:$0xff]   ;;  %v3464_v15 = vld [vmem:[#allocation7 + $0x3ac] ss:$16 sps:$4 sm:$0xff]  }
 0x153   :  { %2129 = vmatpush1.bf16.msra.mxu1 %v3330_v52  ;;  %2047 = vmatpush1.bf16.msra.mxu0 %v3327_v53  ;;  %v3387_v52 = vld [vmem:[#allocation7 + $0x620] ss:$16 sps:$4 sm:$0xff]   ;;  %v3398_v53 = vld [vmem:[#allocation7 + $0x24c] ss:$16 sps:$4 sm:$0xff]  }
 0x154   :  { %2130 = vmatprep.subr.bf16.mxu1 %v3338_v54  ;;  %2048 = vmatprep.subr.bf16.mxu0 %v3335_v55  ;;  %v3395_v54 = vld [vmem:[#allocation7 + $0x644] ss:$16 sps:$4 sm:$0xff]   ;;  %v3396_v55 = vld [vmem:[#allocation7 + $0x248] ss:$16 sps:$4 sm:$0xff]  }
 0x157   :  { %2131 = vmatpush1.bf16.msra.mxu1 %v3336_v56  ;;  %2049 = vmatpush1.bf16.msra.mxu0 %v3333_v57  ;;  %v3404_v56 = vld [vmem:[#allocation7 + $0x26c] ss:$16 sps:$4 sm:$0xff]   ;;  %v3401_v57 = vld [vmem:[#allocation7 + $0x664] ss:$16 sps:$4 sm:$0xff]  }
 0x158   :  { %2132 = vmatprep.subr.bf16.mxu1 %v3344_v58  ;;  %2050 = vmatprep.subr.bf16.mxu0 %v3341_v59  ;;  %v3402_v58 = vld [vmem:[#allocation7 + $0x268] ss:$16 sps:$4 sm:$0xff]   ;;  %v3399_v59 = vld [vmem:[#allocation7 + $0x660] ss:$16 sps:$4 sm:$0xff]  }
 0x15b   :  { %2133 = vmatpush1.bf16.msra.mxu1 %v3342_v60  ;;  %2051 = vmatpush1.bf16.msra.mxu0 %v3339_v61  ;;  %v3407_v60 = vld [vmem:[#allocation7 + $0x684] ss:$16 sps:$4 sm:$0xff]   ;;  %v3408_v61 = vld [vmem:[#allocation7 + $0x288] ss:$16 sps:$4 sm:$0xff]  }
 0x15c   :  { %2134 = vmatprep.subr.bf16.mxu1 %v3350_v62  ;;  %2052 = vmatprep.subr.bf16.mxu0 %v3347_v63  ;;  %v3405_v62 = vld [vmem:[#allocation7 + $0x680] ss:$16 sps:$4 sm:$0xff]   ;;  %v3416_v63 = vld [vmem:[#allocation7 + $0x2ac] ss:$16 sps:$4 sm:$0xff]  }
 0x15f   :  { %2135 = vmatpush1.bf16.msra.mxu1 %v3348_v0  ;;  %2053 = vmatpush1.bf16.msra.mxu0 %v3345_v1  ;;  %v3413_v0 = vld [vmem:[#allocation7 + $0x6a4] ss:$16 sps:$4 sm:$0xff]   ;;  %v3414_v1 = vld [vmem:[#allocation7 + $0x2a8] ss:$16 sps:$4 sm:$0xff]  }
 0x160   :  { %2136 = vmatprep.subr.bf16.mxu1 %v3356_v3  ;;  %2054 = vmatprep.subr.bf16.mxu0 %v3353_v4  ;;  %v3411_v3 = vld [vmem:[#allocation7 + $0x6a0] ss:$16 sps:$4 sm:$0xff]   ;;  %v3422_v4 = vld [vmem:[#allocation7 + $0x2cc] ss:$16 sps:$4 sm:$0xff]  }
 0x163   :  { %2137 = vmatpush1.bf16.msra.mxu1 %v3354_v8  ;;  %2055 = vmatpush1.bf16.msra.mxu0 %v3351_v11  ;;  %v3419_v8 = vld [vmem:[#allocation7 + $0x6c4] ss:$16 sps:$4 sm:$0xff]   ;;  %v3417_v11 = vld [vmem:[#allocation7 + $0x6c0] ss:$16 sps:$4 sm:$0xff]  }
 0x164   :  { %2138 = vmatprep.subr.bf16.mxu1 %v3362_v12  ;;  %2056 = vmatprep.subr.bf16.mxu0 %v3359_v13  ;;  %v3428_v12 = vld [vmem:[#allocation7 + $0x2ec] ss:$16 sps:$4 sm:$0xff]   ;;  %v3425_v13 = vld [vmem:[#allocation7 + $0x6e4] ss:$16 sps:$4 sm:$0xff]  }
 0x167   :  { %2139 = vmatpush1.bf16.msra.mxu1 %v3360_v16  ;;  %2057 = vmatpush1.bf16.msra.mxu0 %v3357_v18  ;;  %v3423_v16 = vld [vmem:[#allocation7 + $0x6e0] ss:$16 sps:$4 sm:$0xff]   ;;  %v3431_v18 = vld [vmem:[#allocation7 + $0x704] ss:$16 sps:$4 sm:$0xff]  }
 0x168   :  { %2140 = vmatprep.subr.bf16.mxu1 %v3368_v19  ;;  %2058 = vmatprep.subr.bf16.mxu0 %v3365_v20  ;;  %v3432_v19 = vld [vmem:[#allocation7 + $0x308] ss:$16 sps:$4 sm:$0xff]   ;;  %v3429_v20 = vld [vmem:[#allocation7 + $0x700] ss:$16 sps:$4 sm:$0xff]  }
 0x16b   :  { %2141 = vmatpush1.bf16.msra.mxu1 %v3366_v22  ;;  %2059 = vmatpush1.bf16.msra.mxu0 %v3363_v24  ;;  %v3437_v22 = vld [vmem:[#allocation7 + $0x724] ss:$16 sps:$4 sm:$0xff]   ;;  %v3435_v24 = vld [vmem:[#allocation7 + $0x720] ss:$16 sps:$4 sm:$0xff]  }
 0x16c   :  { %2142 = vmatprep.subr.bf16.mxu1 %v3374_v25  ;;  %2060 = vmatprep.subr.bf16.mxu0 %v3371_v27  ;;  %v3446_v25 = vld [vmem:[#allocation7 + $0x34c] ss:$16 sps:$4 sm:$0xff]   ;;  %v3443_v27 = vld [vmem:[#allocation7 + $0x744] ss:$16 sps:$4 sm:$0xff]  }
 0x16f   :  { %2143 = vmatpush1.bf16.msra.mxu1 %v3372_v30  ;;  %2061 = vmatpush1.bf16.msra.mxu0 %v3369_v31  ;;  %v3452_v30 = vld [vmem:[#allocation7 + $0x36c] ss:$16 sps:$4 sm:$0xff]   ;;  %v3449_v31 = vld [vmem:[#allocation7 + $0x764] ss:$16 sps:$4 sm:$0xff]  }
 0x170   :  { %2144 = vmatprep.subr.bf16.mxu1 %v3380_v32  ;;  %2062 = vmatprep.subr.bf16.mxu0 %v3377_v33  ;;  %v3450_v32 = vld [vmem:[#allocation7 + $0x368] ss:$16 sps:$4 sm:$0xff]   ;;  %v126_v33 = vsub.s32 6, %v3884_v34 }
 0x171   :  { %v2354_v34 = vld [vmem:[%s3988_s6] sm:$0x3] }
 0x173   :  { %2145 = vmatpush1.bf16.msra.mxu1 %v3378_v5  ;;  %2063 = vmatpush1.bf16.msra.mxu0 %v3375_v42  ;;  %v3455_v5 = vld [vmem:[#allocation7 + $0x784] ss:$16 sps:$4 sm:$0xff]   ;;  %v3456_v42 = vld [vmem:[#allocation7 + $0x388] ss:$16 sps:$4 sm:$0xff]  }
 0x174   :  { %2155 = vmatprep.subr.bf16.mxu1 %v3386_v43  ;;  %2073 = vmatprep.subr.bf16.mxu0 %v3383_v44  ;;  %v127_v43 = vrot.slane %v3892_v36, %v126_v33  ;;  %v3453_v44 = vld [vmem:[#allocation7 + $0x780] ss:$16 sps:$4 sm:$0xff]   ;;  %v3599_v33 = vld [vmem:[#allocation8 + $0x84] ss:$8 sps:$4 sm:$0xff]  }
 0x175   :  { %v3465_v36 = vld [vmem:[#allocation7 + $0x7c0] ss:$16 sps:$4 sm:$0xff]  }
 0x176   :  { %2147 = vmatmul.mubr.bf16.vlgmr.msra.gmra.mrb[12].mxu1 %v3915_v6  ;;  %2065 = vmatmul.mubr.bf16.vlgmr.msra.gmra.mrb[8].mxu0 %v3935_v45  ;;  %v3393_v6 = vld [vmem:[#allocation7 + $0x640] ss:$16 sps:$4 sm:$0xff]  }
 0x177   :  { %2156 = vmatpush1.bf16.msra.mxu1 %v3384_v46  ;;  %2074 = vmatpush1.bf16.msra.mxu0 %v3381_v47  ;;  %v3461_v46 = vld [vmem:[#allocation7 + $0x7a4] ss:$16 sps:$4 sm:$0xff]   ;;  %v3462_v47 = vld [vmem:[#allocation7 + $0x3a8] ss:$16 sps:$4 sm:$0xff]  }
 0x178   :  { %2187 = vmatprep.mubr.bf16.mxu1 %v3917_v7  ;;  %2075 = vmatprep.subr.bf16.mxu0 %v3389_v48  ;;  %v3410_v7 = vld [vmem:[#allocation7 + $0x28c] ss:$16 sps:$4 sm:$0xff]   ;;  %v362_v48 = vadd.f32 %v3919_v10, %v127_v43  ;;  %v3471_v10 = vld [vmem:[#allocation7 + $0x7e0] ss:$16 sps:$4 sm:$0xff]  }
 0x179   :  { %2157 = vmatprep.subr.bf16.mxu1 %v3392_v49  ;;  %2105 = vmatprep.mubr.bf16.mxu0 %v3938_v50  ;;  %v3459_v49 = vld [vmem:[#allocation7 + $0x7a0] ss:$16 sps:$4 sm:$0xff]   ;;  %v3509_v43 = vld [vmem:[#allocation7 + $0x54c] ss:$16 sps:$4 sm:$0xff]  }
 0x17b   :  { %2158 = vmatpush1.bf16.msra.mxu1 %v3390_v51  ;;  %2076 = vmatpush1.bf16.msra.mxu0 %v3387_v52  ;;  %v3470_v51 = vld [vmem:[#allocation7 + $0x3cc] ss:$16 sps:$4 sm:$0xff]   ;;  %v3467_v52 = vld [vmem:[#allocation7 + $0x7c4] ss:$16 sps:$4 sm:$0xff]  }
 0x17c   :  { %2159 = vmatprep.subr.bf16.mxu1 %v3398_v53  ;;  %2077 = vmatprep.subr.bf16.mxu0 %v3395_v54  ;;  %v374_v53 = vmul.f32 0.2, %v362_v48  ;;  %v3468_v54 = vld [vmem:[#allocation7 + $0x3c8] ss:$16 sps:$4 sm:$0xff]  }
 0x17f   :  { %2160 = vmatpush1.bf16.msra.mxu1 %v3396_v55  ;;  %2078 = vmatpush1.bf16.msra.mxu0 %v3393_v6  ;;  %v3476_v55 = vld [vmem:[#allocation7 + $0x3ec] ss:$16 sps:$4 sm:$0xff]   ;;  %v3473_v6 = vld [vmem:[#allocation7 + $0x7e4] ss:$16 sps:$4 sm:$0xff]  }
 0x180   :  { %2161 = vmatprep.subr.bf16.mxu1 %v3404_v56  ;;  %2079 = vmatprep.subr.bf16.mxu0 %v3401_v57  ;;  %v382_v56 = vmax.f32 %v362_v48, %v374_v53  ;;  %v3474_v57 = vld [vmem:[#allocation7 + $0x3e8] ss:$16 sps:$4 sm:$0xff]  }
 0x181   :  { %v3603_v48 = vld [vmem:[#allocation8 + $0xa0] ss:$8 sps:$4 sm:$0xff]   ;;  %v3606_v53 = vld [vmem:[#allocation8 + $0xb0] ss:$8 sps:$4 sm:$0xff]  }
 0x183   :  { %2162 = vmatpush1.bf16.msra.mxu1 %v3402_v58  ;;  %2080 = vmatpush1.bf16.msra.mxu0 %v3399_v59  ;;  %v3479_v58 = vld [vmem:[#allocation7 + $0x40c] ss:$16 sps:$4 sm:$0xff]   ;;  %v3946_v59 = vpack.c.bf16 %v382_v56, %v382_v56  ;;  %v3516_v56 = vld [vmem:[#allocation7 + $0x5a8] ss:$16 sps:$4 sm:$0xff]  }
 0x184   :  { %2163 = vmatprep.subr.bf16.mxu1 %v3410_v7  ;;  %2081 = vmatprep.subr.bf16.mxu0 %v3407_v60  ;;  %v3477_v7 = vld [vmem:[#allocation7 + $0x408] ss:$16 sps:$4 sm:$0xff]   ;;  %v3482_v60 = vld [vmem:[#allocation7 + $0x42c] ss:$16 sps:$4 sm:$0xff]  }
 0x187   :  { %2164 = vmatpush1.bf16.msra.mxu1 %v3408_v61  ;;  %2082 = vmatpush1.bf16.msra.mxu0 %v3405_v62  ;;  %v3573_v61 = vld [vmem:[#allocation8] ss:$8 sps:$4 sm:$0xff]   ;;  %v3575_v62 = vld [vmem:[#allocation8 + $0x4] ss:$8 sps:$4 sm:$0xff]  }
 0x188   :  { %2165 = vmatprep.subr.bf16.mxu1 %v3416_v63  ;;  %2083 = vmatprep.subr.bf16.mxu0 %v3413_v0  ;;  %v3480_v63 = vld [vmem:[#allocation7 + $0x428] ss:$16 sps:$4 sm:$0xff]   ;;  %v3578_v0 = vld [vmem:[#allocation8 + $0x14] ss:$8 sps:$4 sm:$0xff]  }
 0x18b   :  { %2166 = vmatpush1.bf16.msra.mxu1 %v3414_v1  ;;  %2084 = vmatpush1.bf16.msra.mxu0 %v3411_v3  ;;  %v3485_v1 = vld [vmem:[#allocation7 + $0x44c] ss:$16 sps:$4 sm:$0xff]   ;;  %v3576_v3 = vld [vmem:[#allocation8 + $0x10] ss:$8 sps:$4 sm:$0xff]  }
 0x18c   :  { %2167 = vmatprep.subr.bf16.mxu1 %v3422_v4  ;;  %2085 = vmatprep.subr.bf16.mxu0 %v3419_v8  ;;  %v3483_v4 = vld [vmem:[#allocation7 + $0x448] ss:$16 sps:$4 sm:$0xff]   ;;  %v3581_v8 = vld [vmem:[#allocation8 + $0x24] ss:$8 sps:$4 sm:$0xff]  }
 0x18f   :  { %2168 = vmatpush1.bf16.msra.mxu1 %v3420_v9  ;;  %2086 = vmatpush1.bf16.msra.mxu0 %v3417_v11  ;;  %v3579_v9 = vld [vmem:[#allocation8 + $0x20] ss:$8 sps:$4 sm:$0xff]  }
 0x190   :  { %2169 = vmatprep.subr.bf16.mxu1 %v3428_v12  ;;  %2087 = vmatprep.subr.bf16.mxu0 %v3425_v13  ;;  %v3486_v11 = vld [vmem:[#allocation7 + $0x468] ss:$16 sps:$4 sm:$0xff]   ;;  %v3584_v12 = vld [vmem:[#allocation8 + $0x34] ss:$8 sps:$4 sm:$0xff]  }
 0x191   :  { %v3491_v13 = vld [vmem:[#allocation7 + $0x48c] ss:$16 sps:$4 sm:$0xff]  }
 0x193   :  { %2170 = vmatpush1.bf16.msra.mxu1 %v3426_v14  ;;  %2088 = vmatpush1.bf16.msra.mxu0 %v3423_v16  ;;  %v3489_v14 = vld [vmem:[#allocation7 + $0x488] ss:$16 sps:$4 sm:$0xff]   ;;  %v3587_v16 = vld [vmem:[#allocation8 + $0x44] ss:$8 sps:$4 sm:$0xff]  }
 0x194   :  { %2171 = vmatprep.subr.bf16.mxu1 %v3434_v17  ;;  %2089 = vmatprep.subr.bf16.mxu0 %v3431_v18  ;;  %v3494_v17 = vld [vmem:[#allocation7 + $0x4ac] ss:$16 sps:$4 sm:$0xff]   ;;  %v3585_v18 = vld [vmem:[#allocation8 + $0x40] ss:$8 sps:$4 sm:$0xff]  }
 0x197   :  { %2172 = vmatpush1.bf16.msra.mxu1 %v3432_v19  ;;  %2090 = vmatpush1.bf16.msra.mxu0 %v3429_v20  ;;  %v3492_v19 = vld [vmem:[#allocation7 + $0x4a8] ss:$16 sps:$4 sm:$0xff]   ;;  %v3590_v20 = vld [vmem:[#allocation8 + $0x54] ss:$8 sps:$4 sm:$0xff]  }
 0x198   :  { %2173 = vmatprep.subr.bf16.mxu1 %v3440_v21  ;;  %2091 = vmatprep.subr.bf16.mxu0 %v3437_v22  ;;  %v3497_v21 = vld [vmem:[#allocation7 + $0x4cc] ss:$16 sps:$4 sm:$0xff]   ;;  %v3588_v22 = vld [vmem:[#allocation8 + $0x50] ss:$8 sps:$4 sm:$0xff]  }
 0x19b   :  { %2174 = vmatpush1.bf16.msra.mxu1 %v3438_v23  ;;  %2092 = vmatpush1.bf16.msra.mxu0 %v3435_v24  ;;  %v3495_v23 = vld [vmem:[#allocation7 + $0x4c8] ss:$16 sps:$4 sm:$0xff]   ;;  %v3593_v24 = vld [vmem:[#allocation8 + $0x64] ss:$8 sps:$4 sm:$0xff]  }
 0x19c   :  { %2175 = vmatprep.subr.bf16.mxu1 %v3446_v25  ;;  %2093 = vmatprep.subr.bf16.mxu0 %v3443_v27  ;;  %v3500_v25 = vld [vmem:[#allocation7 + $0x4ec] ss:$16 sps:$4 sm:$0xff]   ;;  %v3591_v27 = vld [vmem:[#allocation8 + $0x60] ss:$8 sps:$4 sm:$0xff]  }
 0x19f   :  { %2176 = vmatpush1.bf16.msra.mxu1 %v3444_v28  ;;  %2094 = vmatpush1.bf16.msra.mxu0 %v3441_v29  ;;  %v3498_v28 = vld [vmem:[#allocation7 + $0x4e8] ss:$16 sps:$4 sm:$0xff]   ;;  %v3596_v29 = vld [vmem:[#allocation8 + $0x74] ss:$8 sps:$4 sm:$0xff]  }
 0x1a0   :  { %2177 = vmatprep.subr.bf16.mxu1 %v3452_v30  ;;  %2095 = vmatprep.subr.bf16.mxu0 %v3449_v31  ;;  %v3503_v30 = vld [vmem:[#allocation7 + $0x50c] ss:$16 sps:$4 sm:$0xff]   ;;  %v3594_v31 = vld [vmem:[#allocation8 + $0x70] ss:$8 sps:$4 sm:$0xff]  }
 0x1a3   :  { %2178 = vmatpush1.bf16.msra.mxu1 %v3450_v32  ;;  %2096 = vmatpush1.bf16.msra.mxu0 %v3447_v40  ;;  %v3501_v32 = vld [vmem:[#allocation7 + $0x508] ss:$16 sps:$4 sm:$0xff]   ;;  %v3506_v40 = vld [vmem:[#allocation7 + $0x52c] ss:$16 sps:$4 sm:$0xff]  }
 0x1a4   :  { %2179 = vmatprep.subr.bf16.mxu1 %v3458_v41  ;;  %2097 = vmatprep.subr.bf16.mxu0 %v3455_v5  ;;  %v3597_v41 = vld [vmem:[#allocation8 + $0x80] ss:$8 sps:$4 sm:$0xff]  }
 0x1a5   :  { %v3504_v5 = vld [vmem:[#allocation7 + $0x528] ss:$16 sps:$4 sm:$0xff]  }
 0x1a7   :  { %2180 = vmatpush1.bf16.msra.mxu1 %v3456_v42  ;;  %2098 = vmatpush1.bf16.msra.mxu0 %v3453_v44  ;;  %v3602_v42 = vld [vmem:[#allocation8 + $0x94] ss:$8 sps:$4 sm:$0xff]   ;;  %v3600_v44 = vld [vmem:[#allocation8 + $0x90] ss:$8 sps:$4 sm:$0xff]  }
 0x1a8   :  { %2181 = vmatprep.subr.bf16.mxu1 %v3464_v15  ;;  %2099 = vmatprep.subr.bf16.mxu0 %v3461_v46  ;;  %v3507_v15 = vld [vmem:[#allocation7 + $0x548] ss:$16 sps:$4 sm:$0xff]   ;;  %v3605_v46 = vld [vmem:[#allocation8 + $0xa4] ss:$8 sps:$4 sm:$0xff]  }
 0x1ab   :  { %2182 = vmatpush1.bf16.msra.mxu1 %v3462_v47  ;;  %2100 = vmatpush1.bf16.msra.mxu0 %v3459_v49  ;;  %v3512_v47 = vld [vmem:[#allocation7 + $0x56c] ss:$16 sps:$4 sm:$0xff]   ;;  %v3510_v49 = vld [vmem:[#allocation7 + $0x568] ss:$16 sps:$4 sm:$0xff]  }
 0x1ac   :  { %2183 = vmatprep.subr.bf16.mxu1 %v3470_v51  ;;  %2101 = vmatprep.subr.bf16.mxu0 %v3467_v52  ;;  %v3608_v51 = vld [vmem:[#allocation8 + $0xb4] ss:$8 sps:$4 sm:$0xff]  }
 0x1ad   :  { %v3515_v52 = vld [vmem:[#allocation7 + $0x58c] ss:$16 sps:$4 sm:$0xff]  }
 0x1af   :  { %2184 = vmatpush1.bf16.msra.mxu1 %v3468_v54  ;;  %2102 = vmatpush1.bf16.msra.mxu0 %v3465_v36  ;;  %v3513_v54 = vld [vmem:[#allocation7 + $0x588] ss:$16 sps:$4 sm:$0xff]   ;;  %v3611_v36 = vld [vmem:[#allocation8 + $0xc4] ss:$8 sps:$4 sm:$0xff]  }
 0x1b0   :  { %2185 = vmatprep.subr.bf16.mxu1 %v3476_v55  ;;  %2103 = vmatprep.subr.bf16.mxu0 %v3473_v6  ;;  %v3518_v55 = vld [vmem:[#allocation7 + $0x5ac] ss:$16 sps:$4 sm:$0xff]   ;;  %v3609_v6 = vld [vmem:[#allocation8 + $0xc0] ss:$8 sps:$4 sm:$0xff]  }
 0x1b3   :  { %2186 = vmatpush1.bf16.msra.mxu1 %v3474_v57  ;;  %2104 = vmatpush1.bf16.msra.mxu0 %v3471_v10  ;;  %v3614_v57 = vld [vmem:[#allocation8 + $0xd4] ss:$8 sps:$4 sm:$0xff]  }
 0x1b4   :  { %2196 = vmatprep.subr.bf16.mxu1 %v3479_v58  ;;  %2686 = vmatprep.subr.bf16.mxu0 %v3575_v62  ;;  %v3521_v10 = vld [vmem:[#allocation7 + $0x5cc] ss:$16 sps:$4 sm:$0xff]   ;;  %v3612_v58 = vld [vmem:[#allocation8 + $0xd0] ss:$8 sps:$4 sm:$0xff]  }
 0x1b5   :  { %v3527_v62 = vld [vmem:[#allocation7 + $0x60c] ss:$16 sps:$4 sm:$0xff]  }
 0x1b6   :  { %2188 = vmatmul.mubr.bf16.vlgmr.msra.gmra.mrb[12].mxu1 %v3911_v2  ;;  %2106 = vmatmul.mubr.bf16.vlgmr.msra.gmra.mrb[8].mxu0 %v3946_v59  ;;  %v3488_v2 = vld [vmem:[#allocation7 + $0x46c] ss:$16 sps:$4 sm:$0xff]  }
 0x1b7   :  { %2197 = vmatpush1.bf16.msra.mxu1 %v3477_v7  ;;  %2228 = vmatprep.mubr.bf16.mxu1 %v3926_v26  ;;  %v3582_v26 = vld [vmem:[#allocation8 + $0x30] ss:$8 sps:$4 sm:$0xff]  }
 0x1b8   :  { %2198 = vmatprep.subr.bf16.mxu1 %v3482_v60  ;;  %2687 = vmatpush1.bf16.msra.mxu0 %v3573_v61  ;;  %v3519_v7 = vld [vmem:[#allocation7 + $0x5c8] ss:$16 sps:$4 sm:$0xff]   ;;  %v3524_v60 = vld [vmem:[#allocation7 + $0x5ec] ss:$16 sps:$4 sm:$0xff]  }
 0x1b9   :  { %2688 = vmatprep.subr.bf16.mxu0 %v3578_v0  ;;  %v3522_v61 = vld [vmem:[#allocation7 + $0x5e8] ss:$16 sps:$4 sm:$0xff]   ;;  %v3530_v0 = vld [vmem:[#allocation7 + $0x62c] ss:$16 sps:$4 sm:$0xff]  }
 0x1bb   :  { %2199 = vmatpush1.bf16.msra.mxu1 %v3480_v63  ;;  %v3525_v63 = vld [vmem:[#allocation7 + $0x608] ss:$16 sps:$4 sm:$0xff]  }
 0x1bc   :  { %2200 = vmatprep.subr.bf16.mxu1 %v3485_v1  ;;  %2689 = vmatpush1.bf16.msra.mxu0 %v3576_v3  ;;  %v3528_v1 = vld [vmem:[#allocation7 + $0x628] ss:$16 sps:$4 sm:$0xff]   ;;  %v3533_v3 = vld [vmem:[#allocation7 + $0x64c] ss:$16 sps:$4 sm:$0xff]  }
 0x1bd   :  { %2690 = vmatprep.subr.bf16.mxu0 %v3581_v8  ;;  %v3536_v8 = vld [vmem:[#allocation7 + $0x66c] ss:$16 sps:$4 sm:$0xff]  }
 0x1bf   :  { %2201 = vmatpush1.bf16.msra.mxu1 %v3483_v4  ;;  %v3531_v4 = vld [vmem:[#allocation7 + $0x648] ss:$16 sps:$4 sm:$0xff]  }
 0x1c0   :  { %2202 = vmatprep.subr.bf16.mxu1 %v3488_v2  ;;  %2691 = vmatpush1.bf16.msra.mxu0 %v3579_v9  ;;  %v3534_v2 = vld [vmem:[#allocation7 + $0x668] ss:$16 sps:$4 sm:$0xff]   ;;  %v3539_v9 = vld [vmem:[#allocation7 + $0x68c] ss:$16 sps:$4 sm:$0xff]  }
 0x1c1   :  { %2692 = vmatprep.subr.bf16.mxu0 %v3584_v12  ;;  %v3542_v12 = vld [vmem:[#allocation7 + $0x6ac] ss:$16 sps:$4 sm:$0xff]  }
 0x1c3   :  { %2203 = vmatpush1.bf16.msra.mxu1 %v3486_v11  ;;  %v3537_v11 = vld [vmem:[#allocation7 + $0x688] ss:$16 sps:$4 sm:$0xff]  }
 0x1c4   :  { %2204 = vmatprep.subr.bf16.mxu1 %v3491_v13  ;;  %2693 = vmatpush1.bf16.msra.mxu0 %v3582_v26  ;;  %v3545_v13 = vld [vmem:[#allocation7 + $0x6cc] ss:$16 sps:$4 sm:$0xff]  }
 0x1c5   :  { %2694 = vmatprep.subr.bf16.mxu0 %v3587_v16  ;;  %v3543_v16 = vld [vmem:[#allocation7 + $0x6c8] ss:$16 sps:$4 sm:$0xff]  }
 0x1c7   :  { %2205 = vmatpush1.bf16.msra.mxu1 %v3489_v14 }
 0x1c8   :  { %2206 = vmatprep.subr.bf16.mxu1 %v3494_v17  ;;  %2695 = vmatpush1.bf16.msra.mxu0 %v3585_v18  ;;  %v3617_v17 = vld [vmem:[#allocation8 + $0xe4] ss:$8 sps:$4 sm:$0xff]  }
 0x1c9   :  { %2696 = vmatprep.subr.bf16.mxu0 %v3590_v20  ;;  %v3615_v20 = vld [vmem:[#allocation8 + $0xe0] ss:$8 sps:$4 sm:$0xff]  }
 0x1cb   :  { %2207 = vmatpush1.bf16.msra.mxu1 %v3492_v19  ;;  %v3548_v19 = vld [vmem:[#allocation7 + $0x6ec] ss:$16 sps:$4 sm:$0xff]  }
 0x1cc   :  { %2208 = vmatprep.subr.bf16.mxu1 %v3497_v21  ;;  %2697 = vmatpush1.bf16.msra.mxu0 %v3588_v22  ;;  %v3546_v21 = vld [vmem:[#allocation7 + $0x6e8] ss:$16 sps:$4 sm:$0xff]   ;;  %v3620_v22 = vld [vmem:[#allocation8 + $0xf4] ss:$8 sps:$4 sm:$0xff]  }
 0x1cd   :  { %2698 = vmatprep.subr.bf16.mxu0 %v3593_v24  ;;  %v3618_v24 = vld [vmem:[#allocation8 + $0xf0] ss:$8 sps:$4 sm:$0xff]  }
 0x1cf   :  { %2209 = vmatpush1.bf16.msra.mxu1 %v3495_v23  ;;  %v3551_v23 = vld [vmem:[#allocation7 + $0x70c] ss:$16 sps:$4 sm:$0xff]  }
 0x1d0   :  { %2210 = vmatprep.subr.bf16.mxu1 %v3500_v25  ;;  %2699 = vmatpush1.bf16.msra.mxu0 %v3591_v27  ;;  %v3549_v25 = vld [vmem:[#allocation7 + $0x708] ss:$16 sps:$4 sm:$0xff]   ;;  %v3554_v27 = vld [vmem:[#allocation7 + $0x72c] ss:$16 sps:$4 sm:$0xff]  }
 0x1d1   :  { %2700 = vmatprep.subr.bf16.mxu0 %v3596_v29  ;;  %v3552_v29 = vld [vmem:[#allocation7 + $0x728] ss:$16 sps:$4 sm:$0xff]  }
 0x1d3   :  { %2211 = vmatpush1.bf16.msra.mxu1 %v3498_v28  ;;  %v3623_v28 = vld [vmem:[#allocation8 + $0x104] ss:$8 sps:$4 sm:$0xff]  }
 0x1d4   :  { %2212 = vmatprep.subr.bf16.mxu1 %v3503_v30  ;;  %2701 = vmatpush1.bf16.msra.mxu0 %v3594_v31  ;;  %v3557_v30 = vld [vmem:[#allocation7 + $0x74c] ss:$16 sps:$4 sm:$0xff]   ;;  %v3555_v31 = vld [vmem:[#allocation7 + $0x748] ss:$16 sps:$4 sm:$0xff]  }
 0x1d5   :  { %2702 = vmatprep.subr.bf16.mxu0 %v3599_v33  ;;  %v3558_v33 = vld [vmem:[#allocation7 + $0x768] ss:$16 sps:$4 sm:$0xff]  }
 0x1d7   :  { %2213 = vmatpush1.bf16.msra.mxu1 %v3501_v32  ;;  %v3560_v32 = vld [vmem:[#allocation7 + $0x76c] ss:$16 sps:$4 sm:$0xff]  }
 0x1d8   :  { %2214 = vmatprep.subr.bf16.mxu1 %v3506_v40  ;;  %2703 = vmatpush1.bf16.msra.mxu0 %v3597_v41  ;;  %v3563_v40 = vld [vmem:[#allocation7 + $0x78c] ss:$16 sps:$4 sm:$0xff]   ;;  %v3561_v41 = vld [vmem:[#allocation7 + $0x788] ss:$16 sps:$4 sm:$0xff]  }
 0x1d9   :  { %2704 = vmatprep.subr.bf16.mxu0 %v3602_v42  ;;  %v3564_v42 = vld [vmem:[#allocation7 + $0x7a8] ss:$16 sps:$4 sm:$0xff]  }
 0x1db   :  { %2215 = vmatpush1.bf16.msra.mxu1 %v3504_v5  ;;  %v3566_v5 = vld [vmem:[#allocation7 + $0x7ac] ss:$16 sps:$4 sm:$0xff]  }
 0x1dc   :  { %2216 = vmatprep.subr.bf16.mxu1 %v3509_v43  ;;  %2705 = vmatpush1.bf16.msra.mxu0 %v3600_v44  ;;  %v3569_v43 = vld [vmem:[#allocation7 + $0x7cc] ss:$16 sps:$4 sm:$0xff]   ;;  %v3567_v44 = vld [vmem:[#allocation7 + $0x7c8] ss:$16 sps:$4 sm:$0xff]  }
 0x1dd   :  { %2706 = vmatprep.subr.bf16.mxu0 %v3605_v46  ;;  %v3570_v46 = vld [vmem:[#allocation7 + $0x7e8] ss:$16 sps:$4 sm:$0xff]  }
 0x1df   :  { %2217 = vmatpush1.bf16.msra.mxu1 %v3507_v15  ;;  %v3572_v15 = vld [vmem:[#allocation7 + $0x7ec] ss:$16 sps:$4 sm:$0xff]  }
 0x1e0   :  { %2218 = vmatprep.subr.bf16.mxu1 %v3512_v47  ;;  %2707 = vmatpush1.bf16.msra.mxu0 %v3603_v48  ;;  %v3957_v47 = vld [vmem:[%s3986_s4] sm:$0xf] }
 0x1e1   :  { %2708 = vmatprep.subr.bf16.mxu0 %v3608_v51  ;;  %v653_v48 = vrot.slane %v3957_v47, %v3887_v35 }
 0x1e3   :  { %2219 = vmatpush1.bf16.msra.mxu1 %v3510_v49  ;;  %v657_v49 = vrot.slane %v3957_v47, %v3896_v38 }
 0x1e4   :  { %2220 = vmatprep.subr.bf16.mxu1 %v3515_v52  ;;  %2709 = vmatpush1.bf16.msra.mxu0 %v3606_v53 }
 0x1e5   :  { %2710 = vmatprep.subr.bf16.mxu0 %v3611_v36 }
 0x1e7   :  { %2221 = vmatpush1.bf16.msra.mxu1 %v3513_v54 }
 0x1e8   :  { %2222 = vmatprep.subr.bf16.mxu1 %v3518_v55  ;;  %2711 = vmatpush1.bf16.msra.mxu0 %v3609_v6 }
 0x1e9   :  { %2712 = vmatprep.subr.bf16.mxu0 %v3614_v57 }
 0x1eb   :  { %2223 = vmatpush1.bf16.msra.mxu1 %v3516_v56 }
 0x1ec   :  { %2224 = vmatprep.subr.bf16.mxu1 %v3521_v10  ;;  %2713 = vmatpush1.bf16.msra.mxu0 %v3612_v58 }
 0x1ed   :  { %2714 = vmatprep.subr.bf16.mxu0 %v3617_v17  ;;  %v3648_v17 = vld [vmem:[#allocation8 + $0x190] ss:$8 sps:$4 sm:$0xff]  }
 0x1ef   :  { %2225 = vmatpush1.bf16.msra.mxu1 %v3519_v7 }
 0x1f0   :  { %2226 = vmatprep.subr.bf16.mxu1 %v3524_v60  ;;  %2715 = vmatpush1.bf16.msra.mxu0 %v3615_v20  ;;  %v3621_v60 = vld [vmem:[#allocation8 + $0x100] ss:$8 sps:$4 sm:$0xff]   ;;  %v3656_v20 = vld [vmem:[#allocation8 + $0x1b4] ss:$8 sps:$4 sm:$0xff]  }
 0x1f1   :  { %2716 = vmatprep.subr.bf16.mxu0 %v3620_v22  ;;  %v3659_v22 = vld [vmem:[#allocation8 + $0x1c4] ss:$8 sps:$4 sm:$0xff]  }
 0x1f3   :  { %2227 = vmatpush1.bf16.msra.mxu1 %v3522_v61 }
 0x1f4   :  { %2237 = vmatprep.subr.bf16.mxu1 %v3527_v62  ;;  %2717 = vmatpush1.bf16.msra.mxu0 %v3618_v24  ;;  %v3626_v62 = vld [vmem:[#allocation8 + $0x114] ss:$8 sps:$4 sm:$0xff]  }
 0x1f5   :  { %2727 = vmatprep.subr.bf16.mxu0 %v3623_v28  ;;  %v3662_v24 = vld [vmem:[#allocation8 + $0x1d4] ss:$8 sps:$4 sm:$0xff]   ;;  %v3663_v28 = vld [vmem:[#allocation8 + $0x1e0] ss:$8 sps:$4 sm:$0xff]  }
 0x1f6   :  { %2229 = vmatmul.mubr.bf16.vlgmr.msra.gmra.mrb[12].mxu1 %v3935_v45  ;;  %v3540_v45 = vld [vmem:[#allocation7 + $0x6a8] ss:$16 sps:$4 sm:$0xff]  }
 0x1f7   :  { %2238 = vmatpush1.bf16.msra.mxu1 %v3525_v63  ;;  %2269 = vmatprep.mubr.bf16.mxu1 %v3938_v50  ;;  %v3624_v63 = vld [vmem:[#allocation8 + $0x110] ss:$8 sps:$4 sm:$0xff]  }
 0x1f8   :  { %2239 = vmatprep.subr.bf16.mxu1 %v3530_v0  ;;  %v3629_v0 = vld [vmem:[#allocation8 + $0x124] ss:$8 sps:$4 sm:$0xff]  }
 0x1fb   :  { %2240 = vmatpush1.bf16.msra.mxu1 %v3528_v1  ;;  %v3627_v1 = vld [vmem:[#allocation8 + $0x120] ss:$8 sps:$4 sm:$0xff]  }
 0x1fc   :  { %2241 = vmatprep.subr.bf16.mxu1 %v3533_v3  ;;  %v3632_v3 = vld [vmem:[#allocation8 + $0x134] ss:$8 sps:$4 sm:$0xff]  }
 0x1ff   :  { %2242 = vmatpush1.bf16.msra.mxu1 %v3531_v4  ;;  %v3630_v4 = vld [vmem:[#allocation8 + $0x130] ss:$8 sps:$4 sm:$0xff]  }
 0x200   :  { %2243 = vmatprep.subr.bf16.mxu1 %v3536_v8  ;;  %v3635_v8 = vld [vmem:[#allocation8 + $0x144] ss:$8 sps:$4 sm:$0xff]  }
 0x203   :  { %2244 = vmatpush1.bf16.msra.mxu1 %v3534_v2  ;;  %v3633_v2 = vld [vmem:[#allocation8 + $0x140] ss:$8 sps:$4 sm:$0xff]  }
 0x204   :  { %2245 = vmatprep.subr.bf16.mxu1 %v3539_v9  ;;  %v3638_v9 = vld [vmem:[#allocation8 + $0x154] ss:$8 sps:$4 sm:$0xff]  }
 0x207   :  { %2246 = vmatpush1.bf16.msra.mxu1 %v3537_v11  ;;  %v3636_v11 = vld [vmem:[#allocation8 + $0x150] ss:$8 sps:$4 sm:$0xff]  }
 0x208   :  { %2247 = vmatprep.subr.bf16.mxu1 %v3542_v12  ;;  %v3641_v12 = vld [vmem:[#allocation8 + $0x164] ss:$8 sps:$4 sm:$0xff]  }
 0x209   :  { %v1984_v50 = vpop.f32.mrb[8].mxu1 }
 0x20a   :  { %v1986_v26 = vpop.f32.mrb[9].mxu1  ;;  %v1985_v51 = vadd.f32 %v1984_v50, %v653_v48  ;;  %v3642_v50 = vld [vmem:[#allocation8 + $0x170] ss:$8 sps:$4 sm:$0xff]  }
 0x20b   :  { %2248 = vmatpush1.bf16.msra.mxu1 %v3540_v45  ;;  %v1988_v14 = vpop.f32.mrb[10].mxu1  ;;  %v1987_v52 = vadd.f32 %v1986_v26, %v657_v49  ;;  %v3639_v45 = vld [vmem:[#allocation8 + $0x160] ss:$8 sps:$4 sm:$0xff]   ;;  %v3647_v26 = vld [vmem:[#allocation8 + $0x184] ss:$8 sps:$4 sm:$0xff]  }
 0x20c   :  { %v1989_v18 = vpop.f32.mrb[11].mxu1  ;;  %2249 = vmatprep.subr.bf16.mxu1 %v3545_v13  ;;  %v3644_v13 = vld [vmem:[#allocation8 + $0x174] ss:$8 sps:$4 sm:$0xff]   ;;  %v3645_v14 = vld [vmem:[#allocation8 + $0x180] ss:$8 sps:$4 sm:$0xff]  }
 0x20d   :  { %v3653_v18 = vld [vmem:[#allocation8 + $0x1a4] ss:$8 sps:$4 sm:$0xff]  }
 0x20f   :  { %2250 = vmatpush1.bf16.msra.mxu1 %v3543_v16  ;;  %v3650_v16 = vld [vmem:[#allocation8 + $0x194] ss:$8 sps:$4 sm:$0xff]  }
 0x210   :  { %2251 = vmatprep.subr.bf16.mxu1 %v3548_v19  ;;  %v3651_v19 = vld [vmem:[#allocation8 + $0x1a0] ss:$8 sps:$4 sm:$0xff]  }
 0x213   :  { %2252 = vmatpush1.bf16.msra.mxu1 %v3546_v21  ;;  %v3654_v21 = vld [vmem:[#allocation8 + $0x1b0] ss:$8 sps:$4 sm:$0xff]  }
 0x214   :  { %2253 = vmatprep.subr.bf16.mxu1 %v3551_v23  ;;  %v3657_v23 = vld [vmem:[#allocation8 + $0x1c0] ss:$8 sps:$4 sm:$0xff]  }
 0x217   :  { %2254 = vmatpush1.bf16.msra.mxu1 %v3549_v25  ;;  %v3660_v25 = vld [vmem:[#allocation8 + $0x1d0] ss:$8 sps:$4 sm:$0xff]  }
 0x218   :  { %2255 = vmatprep.subr.bf16.mxu1 %v3554_v27  ;;  %v3665_v27 = vld [vmem:[#allocation8 + $0x1e4] ss:$8 sps:$4 sm:$0xff]  }
 0x21b   :  { %2256 = vmatpush1.bf16.msra.mxu1 %v3552_v29  ;;  %v3668_v29 = vld [vmem:[#allocation8 + $0x1f4] ss:$8 sps:$4 sm:$0xff]  }
 0x21c   :  { %2257 = vmatprep.subr.bf16.mxu1 %v3557_v30  ;;  %v3666_v30 = vld [vmem:[#allocation8 + $0x1f0] ss:$8 sps:$4 sm:$0xff]  }
 0x21f   :  { %2258 = vmatpush1.bf16.msra.mxu1 %v3555_v31  ;;  %v661_v31 = vrot.slane %v3957_v47, %v110_v37  ;;  %v2359_v37 = vrot.slane %v2354_v34, %v3887_v35 }
 0x220   :  { %2259 = vmatprep.subr.bf16.mxu1 %v3560_v32  ;;  %v665_v32 = vrot.slane %v3957_v47, %v114_v39  ;;  %v2363_v39 = vrot.slane %v2354_v34, %v3896_v38 }
 0x223   :  { %2260 = vmatpush1.bf16.msra.mxu1 %v3558_v33 }
 0x224   :  { %2261 = vmatprep.subr.bf16.mxu1 %v3563_v40 }
 0x227   :  { %2262 = vmatpush1.bf16.msra.mxu1 %v3561_v41 }
 0x228   :  { %2263 = vmatprep.subr.bf16.mxu1 %v3566_v5 }
 0x22b   :  { %2264 = vmatpush1.bf16.msra.mxu1 %v3564_v42 }
 0x22c   :  { %2265 = vmatprep.subr.bf16.mxu1 %v3569_v43 }
 0x22f   :  { %2266 = vmatpush1.bf16.msra.mxu1 %v3567_v44 }
 0x230   :  { %2267 = vmatprep.subr.bf16.mxu1 %v3572_v15 }
 0x233   :  { %2268 = vmatpush1.bf16.msra.mxu1 %v3570_v46 }
 0x236   :  { %2270 = vmatmul.mubr.bf16.vlgmr.msra.gmra.mrb[12].mxu1 %v3946_v59 }
 0x289   :  { %v2107_v53 = vpop.f32.mrb[8].mxu0 }
 0x28a   :  { %v3146_v54 = vadd.f32 %v2107_v53, %v1985_v51  ;;  %v2109_v36 = vpop.f32.mrb[9].mxu0 }
 0x28b   :  { %v3148_v55 = vadd.f32 %v2109_v36, %v1987_v52  ;;  %v2111_v6 = vpop.f32.mrb[10].mxu0  ;;  %v2772_v52 = vld [vmem:[%s3989_s7] sm:$0x3] }
 0x28c   :  { %v2278_v56 = vmul.f32 0.2, %v3146_v54  ;;  %v2112_v59 = vpop.f32.mrb[11].mxu0 }
 0x28d   :  { %v2279_v57 = vmul.f32 0.2, %v3148_v55  ;;  %v2777_v59 = vrot.slane %v2772_v52, %v3887_v35 }
 0x28e   :  { %v2282_v10 = vmax.f32 %v3146_v54, %v2278_v56 }
 0x28f   :  { %v2283_v58 = vmax.f32 %v3148_v55, %v2279_v57 }
 0x290   :  { %v2286_v61 = vpack.c.bf16 %v2282_v10, %v2282_v10  ;;  %v2781_v10 = vrot.slane %v2772_v52, %v3896_v38 }
 0x291   :  { %v2287_v7 = vpack.c.bf16 %v2283_v58, %v2283_v58 }
 0x293   :  { %2718 = vmatprep.mubr.bf16.mxu0 %v2287_v7 }
 0x294   :  { %2719 = vmatmul.mubr.bf16.vlgmr.msra.gmra.mrb[12].mxu0 %v2286_v61 }
 0x295   :  { %2728 = vmatpush1.bf16.msra.mxu0 %v3621_v60 }
 0x296   :  { %2729 = vmatprep.subr.bf16.mxu0 %v3626_v62 }
 0x299   :  { %2730 = vmatpush1.bf16.msra.mxu0 %v3624_v63  ;;  %v3144_v63 = vld [vmem:[#allocation2] ss:$0 sm:$0xff] }
 0x29a   :  { %2731 = vmatprep.subr.bf16.mxu0 %v3629_v0 }
 0x29d   :  { %2732 = vmatpush1.bf16.msra.mxu0 %v3627_v1 }
 0x29e   :  { %2733 = vmatprep.subr.bf16.mxu0 %v3632_v3 }
 0x2a1   :  { %2734 = vmatpush1.bf16.msra.mxu0 %v3630_v4 }
 0x2a2   :  { %2735 = vmatprep.subr.bf16.mxu0 %v3635_v8 }
 0x2a5   :  { %2736 = vmatpush1.bf16.msra.mxu0 %v3633_v2 }
 0x2a6   :  { %2737 = vmatprep.subr.bf16.mxu0 %v3638_v9 }
 0x2a9   :  { %2738 = vmatpush1.bf16.msra.mxu0 %v3636_v11 }
 0x2aa   :  { %2739 = vmatprep.subr.bf16.mxu0 %v3641_v12 }
 0x2ad   :  { %2740 = vmatpush1.bf16.msra.mxu0 %v3639_v45 }
 0x2ae   :  { %2741 = vmatprep.subr.bf16.mxu0 %v3644_v13 }
 0x2b1   :  { %2742 = vmatpush1.bf16.msra.mxu0 %v3642_v50 }
 0x2b2   :  { %2743 = vmatprep.subr.bf16.mxu0 %v3647_v26 }
 0x2b5   :  { %2744 = vmatpush1.bf16.msra.mxu0 %v3645_v14 }
 0x2b6   :  { %2745 = vmatprep.subr.bf16.mxu0 %v3650_v16 }
 0x2b9   :  { %2746 = vmatpush1.bf16.msra.mxu0 %v3648_v17 }
 0x2ba   :  { %2747 = vmatprep.subr.bf16.mxu0 %v3653_v18 }
 0x2bd   :  { %2748 = vmatpush1.bf16.msra.mxu0 %v3651_v19 }
 0x2be   :  { %2749 = vmatprep.subr.bf16.mxu0 %v3656_v20 }
 0x2c1   :  { %2750 = vmatpush1.bf16.msra.mxu0 %v3654_v21 }
 0x2c2   :  { %2751 = vmatprep.subr.bf16.mxu0 %v3659_v22 }
 0x2c5   :  { %2752 = vmatpush1.bf16.msra.mxu0 %v3657_v23 }
 0x2c6   :  { %2753 = vmatprep.subr.bf16.mxu0 %v3662_v24 }
 0x2c9   :  { %2754 = vmatpush1.bf16.msra.mxu0 %v3660_v25 }
 0x2ca   :  { %2755 = vmatprep.subr.bf16.mxu0 %v3665_v27 }
 0x2cd   :  { %2756 = vmatpush1.bf16.msra.mxu0 %v3663_v28 }
 0x2ce   :  { %2757 = vmatprep.subr.bf16.mxu0 %v3668_v29 }
 0x2d1   :  { %2758 = vmatpush1.bf16.msra.mxu0 %v3666_v30 }
 0x309   :  { %v2271_v33 = vpop.f32.mrb[12].mxu1 }
 0x30a   :  { %v3149_v40 = vadd.f32 %v2271_v33, %v661_v31  ;;  %v2273_v41 = vpop.f32.mrb[13].mxu1 }
 0x30b   :  { %v3150_v5 = vadd.f32 %v2273_v41, %v665_v32  ;;  %v2275_v42 = vpop.f32.mrb[14].mxu1 }
 0x30c   :  { %v2280_v43 = vmul.f32 0.2, %v3149_v40  ;;  %v2276_v44 = vpop.f32.mrb[15].mxu1 }
 0x30d   :  { %v2281_v15 = vmul.f32 0.2, %v3150_v5 }
 0x30e   :  { %v2284_v46 = vmax.f32 %v3149_v40, %v2280_v43 }
 0x30f   :  { %v2285_v48 = vmax.f32 %v3150_v5, %v2281_v15 }
 0x310   :  { %v2288_v51 = vpack.c.bf16 %v2284_v46, %v2284_v46 }
 0x311   :  { %v2289_v49 = vpack.c.bf16 %v2285_v48, %v2285_v48 }
 0x313   :  { %2759 = vmatprep.mubr.bf16.mxu0 %v2289_v49 }
 0x314   :  { %2760 = vmatmul.mubr.bf16.vlgmr.msra.gmra.mrb[12].mxu0 %v2288_v51 }
 0x3e7   :  { %v2761_v47 = vpop.f32.mrb[12].mxu0 }
 0x3e8   :  { %v3151_v53 = vadd.f32 %v2761_v47, %v2359_v37  ;;  %v2763_v54 = vpop.f32.mrb[13].mxu0 }
 0x3e9   :  { %v3152_v36 = vadd.f32 %v2763_v54, %v2363_v39  ;;  %v2765_v55 = vpop.f32.mrb[14].mxu0 }
 0x3ea   :  { %v2768_v6 = vmul.f32 0.2, %v3151_v53  ;;  %v2766_v56 = vpop.f32.mrb[15].mxu0 }
 0x3eb   :  { %v2769_v57 = vmul.f32 0.2, %v3152_v36 }
 0x3ec   :  { %v2770_v58 = vmax.f32 %v3151_v53, %v2768_v6 }
 0x3ed   :  { %v2771_v7 = vmax.f32 %v3152_v36, %v2769_v57 }
 0x3ee   :  { %v2784_v60 = vmul.f32 %v2777_v59, %v2770_v58 }
 0x3ef   :  { %v2785_v61 = vmul.f32 %v2781_v10, %v2771_v7 }
 0x3f1   :  { %v2786_v62 = vadd.f32 %v2785_v61, %v2784_v60 }
 0x3f3   :  { %2787 = vadd.xlane.f32.xlu0 %v2786_v62 }
 0x480   :  { %v2788_v0 = vpop.xlane.xlu0 %2787 }
 0x481   :  { %v2796_v1 = vadd.f32 %v3144_v63, %v2788_v0 }
 0x483   :  { %v2797_v3 = vsub.f32 0.0, %v2796_v1 }
 0x485   :  { %v2798_v4 = vmul.f32 1.442695, %v2797_v3 }
 0x487   :  { %3669 = vpow2.f32 %v2798_v4 }
 0x491   :  { %v3670_v8 = vpop.eup %3669 }
 0x492   :  { %v2800_v2 = vadd.f32 1.0, %v3670_v8 }
 0x494   :  { %3671 = vrcp.f32 %v2800_v2 }
 0x49e   :  { %v3672_v35 = vpop.eup %3671 }
 0x49f   :  { %2804 = vst.msk [vmem:[%s3991_s9] sm:$0xff] %vm2803_vm3, %v3672_v35 }
 0x4a0   :  { %2809 = vsyncpa [#allocation4], 1 }
 0x4a1   :  { %2810 = vsyncpa [#allocation6], 1 }
 0x4a2   :  { %2811 = vsyncpa [#allocation9], 1 }

</bundles_post_ra>
